<compile_context>
chip_gen: v7x
topology: tpu7x:2x2x1
jax: 0.10.0
libtpu: 0.0.40
codegen_flags: <defaults>
</compile_context>

<pallas_src>
from functools import partial

import jax
import jax.numpy as jnp
from jax import lax
from jax.experimental import pallas as pl
from jax.experimental.pallas import tpu as pltpu


def _round_up(v, m):
    return (v + m - 1) // m * m


def _pick_tile(dim, target, gran):
    """Largest tile <= target that is a multiple of `gran` and divides round_up(dim, gran)."""
    dp = _round_up(dim, gran)
    t = min(max((target // gran) * gran, gran), dp)
    while dp % t:
        t -= gran
    return t


def _pad2(a, rows, cols):
    pr, pc = rows - a.shape[0], cols - a.shape[1]
    if pr or pc:
        a = jnp.pad(a, ((0, pr), (0, pc)))
    return a


def _vmem_capacity_bytes(default=64 * 1024 * 1024):
    """Physical VMEM of the current TPU generation; conservative fallback (v7x-sized)."""
    try:
        info = pltpu.get_tpu_info()
        for name in ("vmem_capacity_bytes", "vmem_size_bytes", "vmem_bytes"):
            v = getattr(info, name, None)
            if v:
                return int(v)
    except Exception:
        pass
    return default


def _lora_linear_kernel(x_ref, w_ref, b_ref, xa_ref, wb_ref, o_ref, acc_ref):
    """One (tm, tn) output tile; k (in_features) is the innermost grid axis."""
    k = pl.program_id(2)

    @pl.when(k == 0)
    def _init():
        acc_ref[...] = jnp.zeros_like(acc_ref)

    # x tile (tm, tk) contracted against W tile (tn, tk) over the last dim of
    # both: the MXU consumes the transposed RHS directly, W is never transposed.
    acc_ref[...] += lax.dot_general(
        x_ref[...], w_ref[...],
        dimension_numbers=(((1,), (1,)), ((), ())),
        preferred_element_type=jnp.float32,
    )

    @pl.when(k == pl.num_programs(2) - 1)
    def _finalize():
        # Bias + LoRA up-projection added exactly once per output tile.
        # alpha is folded into xa, and xa/W_b are f32, so no precision loss here.
        lora = jnp.dot(xa_ref[...], wb_ref[...], preferred_element_type=jnp.float32)
        o_ref[...] = (acc_ref[...] + b_ref[...] + lora).astype(o_ref.dtype)


def linear_with_lora(x, w, b, w_a, w_b, alpha, *,
                     tm=512, tn=512, tk=2048, compute_dtype=None):
    """x: (B, In), w: (Out, In), b: (Out,), w_a: (In, rank), w_b: (rank, Out)."""
    B, In = x.shape
    Out, In_w = w.shape
    assert In_w == In
    rank = w_a.shape[1]
    out_dtype = x.dtype
    cd = jnp.dtype(compute_dtype) if compute_dtype is not None else jnp.dtype(x.dtype)

    # LoRA down-projection hoisted out of the reduction loop; kept in f32
    # (only (B, rank)) so the f32 epilogue dot keeps full precision.
    xa = alpha * jnp.dot(x.astype(jnp.float32), w_a.astype(jnp.float32),
                         preferred_element_type=jnp.float32)

    # ---- tile selection ----------------------------------------------------
    # Tiles always divide the granule-rounded dims -> no full-operand pad copy.
    tm = _pick_tile(B, tm, 8)
    tn = _pick_tile(Out, tn, 128)
    tk = _pick_tile(In, tk, 128)

    Bp = _round_up(B, 8)
    Inp = _round_up(In, 128)
    Outp = _round_up(Out, 128)
    rank_p = _round_up(rank, 8)        # sublane-aligned only (not 128)

    # Keep both v7x TensorCores busy: if both "parallel" axes collapsed to a
    # single block, split the output axis into >= 2 blocks.
    if Bp // tm < 2 and Outp // tn < 2:
        cand = ((tn // 2) // 128) * 128
        while cand >= 128 and Outp % cand:
            cand -= 128
        if cand >= 128:
            tn = cand

    # Fit the double-buffered working set inside this generation's VMEM.
    cd_size = cd.itemsize
    out_size = jnp.dtype(out_dtype).itemsize
    vmem_cap = _vmem_capacity_bytes()
    vmem_budget = min(int(vmem_cap * 0.70), 96 * 1024 * 1024)

    def footprint(tm_, tn_, tk_):
        ins = 2 * (tm_ * tk_ * cd_size + tn_ * tk_ * cd_size            # x, W (double buffered)
                   + tn_ * 4 + tm_ * rank_p * 4 + rank_p * tn_ * 4)     # bias, xa, wb (f32)
        return ins + 2 * tm_ * tn_ * out_size + tm_ * tn_ * 4           # out (x2) + acc

    for _ in range(32):
        if footprint(tm, tn, tk) <= vmem_budget:
            break
        if tk > 512:
            tk = _pick_tile(In, tk // 2, 128)
        elif tn > 256:
            tn = _pick_tile(Out, tn // 2, 128)
        elif tm > 64:
            tm = _pick_tile(B, tm // 2, 8)
        else:
            break

    # ---- minimal padding (at most to the 8/128 granule, never a full tile) --
    x_p = _pad2(x.astype(cd), Bp, Inp)
    w_p = _pad2(w.astype(cd), Outp, Inp)                       # stays (Out, In)
    b_p = _pad2(b.astype(jnp.float32).reshape(1, Out), 1, Outp)
    xa_p = _pad2(xa, Bp, rank_p)
    wb_p = _pad2(w_b.astype(jnp.float32), rank_p, Outp)

    grid = (Bp // tm, Outp // tn, Inp // tk)
    gi, gj, gk = grid

    flops = int(2 * B * In * Out + 2 * B * In * rank + 2 * B * rank * Out)
    # Account for the actual re-streaming (x per output-tile column, W per batch tile).
    bytes_accessed = int(
        gj * x_p.size * cd_size
        + gi * w_p.size * cd_size
        + gi * (b_p.size + wb_p.size) * 4
        + gj * xa_p.size * 4
        + Bp * Outp * out_size
    )

    out_p = pl.pallas_call(
        _lora_linear_kernel,
        out_shape=jax.ShapeDtypeStruct((Bp, Outp), out_dtype),
        grid_spec=pltpu.PrefetchScalarGridSpec(
            num_scalar_prefetch=0,
            grid=grid,
            in_specs=[
                pl.BlockSpec((tm, tk), lambda i, j, k: (i, k)),       # x
                pl.BlockSpec((tn, tk), lambda i, j, k: (j, k)),       # W (Out, In)
                pl.BlockSpec((1, tn), lambda i, j, k: (0, j)),        # bias (f32)
                pl.BlockSpec((tm, rank_p), lambda i, j, k: (i, 0)),   # alpha * x @ W_a (f32)
                pl.BlockSpec((rank_p, tn), lambda i, j, k: (0, j)),   # W_b (f32)
            ],
            out_specs=pl.BlockSpec((tm, tn), lambda i, j, k: (i, j)),
            scratch_shapes=[pltpu.VMEM((tm, tn), jnp.float32)],
        ),
        compiler_params=pltpu.CompilerParams(
            dimension_semantics=("parallel", "parallel", "arbitrary"),
            vmem_limit_bytes=int(vmem_budget),
        ),
        cost_estimate=pl.CostEstimate(
            flops=flops, transcendentals=0, bytes_accessed=bytes_accessed),
    )(x_p, w_p, b_p, xa_p, wb_p)

    if (Bp, Outp) != (B, Out):
        out_p = out_p[:B, :Out]
    return out_p


if __name__ == "__main__":
    # Small, deterministic example consistent with the module's forward.
    B, IN, OUT, RANK = 16, 1024, 512, 8
    ALPHA = 4.0

    key = jax.random.PRNGKey(0)
    kx, kw, kb, ka, kbb = jax.random.split(key, 5)

    x = jax.random.normal(kx, (B, IN), dtype=jnp.float32)
    w = jax.random.normal(kw, (OUT, IN), dtype=jnp.float32) * 0.05   # linear.weight
    b = jax.random.normal(kb, (OUT,), dtype=jnp.float32) * 0.1       # linear.bias
    std_dev = 1.0 / jnp.sqrt(jnp.float32(RANK))
    w_a = jax.random.normal(ka, (IN, RANK), dtype=jnp.float32) * std_dev
    # Module inits W_b = zeros; use random values here to exercise the LoRA path.
    w_b = jax.random.normal(kbb, (RANK, OUT), dtype=jnp.float32) * 0.05

    ref = x @ w.T + b + ALPHA * (x @ w_a @ w_b)

    # 1) Default (auto) tiling, f32 streaming.
    out = jax.block_until_ready(linear_with_lora(x, w, b, w_a, w_b, ALPHA))
    assert out.shape == (B, OUT)
    assert jnp.allclose(out, ref, atol=2e-3, rtol=2e-3), "mismatch (default tiles)"

    # 2) Small explicit tiles -> full 3-D grid (2, 4, 4) exercised, no padding.
    out_t = jax.block_until_ready(
        linear_with_lora(x, w, b, w_a, w_b, ALPHA, tm=8, tn=128, tk=256))
    assert jnp.allclose(out_t, ref, atol=2e-3, rtol=2e-3), "mismatch (small tiles)"

    # 3) bf16 streaming / MXU inputs with f32 accumulation (halves HBM bytes for W).
    out_bf = jax.block_until_ready(
        linear_with_lora(x, w, b, w_a, w_b, ALPHA, compute_dtype=jnp.bfloat16))
    assert jnp.allclose(out_bf, ref, atol=1e-1, rtol=5e-2), "mismatch (bf16 compute)"

    print("KERNEL_OK")
</pallas_src>

<mosaic_0001>
module attributes {stable_mosaic.version = 11 : i64} {
  func.func @_lora_linear_kernel(%arg0: i32, %arg1: i32, %arg2: i32, %arg3: memref<16x1024xf32, #tpu.memory_space<vmem>>, %arg4: memref<256x1024xf32, #tpu.memory_space<vmem>>, %arg5: memref<1x256xf32, #tpu.memory_space<vmem>>, %arg6: memref<16x8xf32, #tpu.memory_space<vmem>>, %arg7: memref<8x256xf32, #tpu.memory_space<vmem>>, %arg8: memref<16x256xf32, #tpu.memory_space<vmem>>, %arg9: memref<16x256xf32, #tpu.memory_space<vmem>>) attributes {dimension_semantics = [#tpu.dimension_semantics<parallel>, #tpu.dimension_semantics<parallel>, #tpu.dimension_semantics<arbitrary>], iteration_bounds = array<i64: 1, 2, 1>, scalar_prefetch = 0 : i64, scratch_operands = 1 : i64, tpu.core_type = #tpu.core_type<tc>, window_params = [{transform_indices = @transform_0, window_bounds = array<i64: 16, 1024>}, {transform_indices = @transform_1, window_bounds = array<i64: 256, 1024>}, {transform_indices = @transform_2, window_bounds = array<i64: 1, 256>}, {transform_indices = @transform_3, window_bounds = array<i64: 16, 8>}, {transform_indices = @transform_4, window_bounds = array<i64: 8, 256>}, {transform_indices = @transform_5, window_bounds = array<i64: 16, 256>}]} {
    %c0_i32 = arith.constant 0 : i32
    %0 = arith.cmpi eq, %arg2, %c0_i32 : i32
    %1 = arith.extui %0 : i1 to i32
    %c0_i32_0 = arith.constant 0 : i32
    %2 = arith.cmpi ne, %1, %c0_i32_0 : i32
    scf.if %2 {
      %cst_10 = arith.constant 0.000000e+00 : f32
      %12 = vector.broadcast %cst_10 : f32 to vector<16x256xf32>
      %c0_11 = arith.constant 0 : index
      %c0_12 = arith.constant 0 : index
      %13 = vector.load %arg9[%c0_11, %c0_12] : memref<16x256xf32, #tpu.memory_space<vmem>>, vector<16x256xf32>
      tpu.vector_store %arg9[%c0_11, %c0_12], %12 {strides = array<i32>} : memref<16x256xf32, #tpu.memory_space<vmem>>, vector<16x256xf32>,
    } else {
    }
    %c0 = arith.constant 0 : index
    %c0_1 = arith.constant 0 : index
    %3 = vector.load %arg9[%c0, %c0_1] : memref<16x256xf32, #tpu.memory_space<vmem>>, vector<16x256xf32>
    %c0_2 = arith.constant 0 : index
    %c0_3 = arith.constant 0 : index
    %4 = vector.load %arg3[%c0_2, %c0_3] : memref<16x1024xf32, #tpu.memory_space<vmem>>, vector<16x1024xf32>
    %c0_4 = arith.constant 0 : index
    %c0_5 = arith.constant 0 : index
    %5 = vector.load %arg4[%c0_4, %c0_5] : memref<256x1024xf32, #tpu.memory_space<vmem>>, vector<256x1024xf32>
    %cst = arith.constant dense<0.000000e+00> : vector<16x256xf32>
    %6 = tpu.matmul %4, %5, %cst {dimension_numbers = #tpu.dot_dimension_numbers<[1], [1], [0], [0], [0, 0, 1, 0], [], []>} : vector<16x1024xf32>, vector<256x1024xf32>, vector<16x256xf32> -> vector<16x256xf32>
    %7 = arith.addf %3, %6 : vector<16x256xf32>
    %c0_6 = arith.constant 0 : index
    %c0_7 = arith.constant 0 : index
    %8 = vector.load %arg9[%c0_6, %c0_7] : memref<16x256xf32, #tpu.memory_space<vmem>>, vector<16x256xf32>
    tpu.vector_store %arg9[%c0_6, %c0_7], %7 {strides = array<i32>} : memref<16x256xf32, #tpu.memory_space<vmem>>, vector<16x256xf32>,
    %c0_i32_8 = arith.constant 0 : i32
    %9 = arith.cmpi eq, %arg2, %c0_i32_8 : i32
    %10 = arith.extui %9 : i1 to i32
    %c0_i32_9 = arith.constant 0 : i32
    %11 = arith.cmpi ne, %10, %c0_i32_9 : i32
    scf.if %11 {
      %c0_10 = arith.constant 0 : index
      %c0_11 = arith.constant 0 : index
      %12 = vector.load %arg6[%c0_10, %c0_11] : memref<16x8xf32, #tpu.memory_space<vmem>>, vector<16x8xf32>
      %c0_12 = arith.constant 0 : index
      %c0_13 = arith.constant 0 : index
      %13 = vector.load %arg7[%c0_12, %c0_13] : memref<8x256xf32, #tpu.memory_space<vmem>>, vector<8x256xf32>
      %cst_14 = arith.constant dense<0.000000e+00> : vector<16x256xf32>
      %14 = tpu.matmul %12, %13, %cst_14 {dimension_numbers = #tpu.dot_dimension_numbers<[1], [0], [0], [1], [0, 0, 1, 1], [], []>} : vector<16x8xf32>, vector<8x256xf32>, vector<16x256xf32> -> vector<16x256xf32>
      %c0_15 = arith.constant 0 : index
      %c0_16 = arith.constant 0 : index
      %15 = vector.load %arg9[%c0_15, %c0_16] : memref<16x256xf32, #tpu.memory_space<vmem>>, vector<16x256xf32>
      %c0_17 = arith.constant 0 : index
      %c0_18 = arith.constant 0 : index
      %16 = vector.load %arg5[%c0_17, %c0_18] : memref<1x256xf32, #tpu.memory_space<vmem>>, vector<1x256xf32>
      %17 = vector.broadcast %16 : vector<1x256xf32> to vector<16x256xf32>
      %18 = arith.addf %15, %17 : vector<16x256xf32>
      %19 = arith.addf %18, %14 : vector<16x256xf32>
      %c0_19 = arith.constant 0 : index
      %c0_20 = arith.constant 0 : index
      %20 = vector.load %arg8[%c0_19, %c0_20] : memref<16x256xf32, #tpu.memory_space<vmem>>, vector<16x256xf32>
      tpu.vector_store %arg8[%c0_19, %c0_20], %19 {strides = array<i32>} : memref<16x256xf32, #tpu.memory_space<vmem>>, vector<16x256xf32>,
    } else {
    }
    return
  }
  func.func @transform_0(%arg0: i32, %arg1: i32, %arg2: i32) -> (i32, i32) {
    %c0_i32 = arith.constant 0 : i32
    return %arg0, %arg2 : i32, i32
  }
  func.func @transform_1(%arg0: i32, %arg1: i32, %arg2: i32) -> (i32, i32) {
    %c0_i32 = arith.constant 0 : i32
    return %arg1, %arg2 : i32, i32
  }
  func.func @transform_2(%arg0: i32, %arg1: i32, %arg2: i32) -> (i32, i32) {
    %c0_i32 = arith.constant 0 : i32
    %c0_i32_0 = arith.constant 0 : i32
    return %c0_i32, %arg1 : i32, i32
  }
  func.func @transform_3(%arg0: i32, %arg1: i32, %arg2: i32) -> (i32, i32) {
    %c0_i32 = arith.constant 0 : i32
    %c0_i32_0 = arith.constant 0 : i32
    return %arg0, %c0_i32 : i32, i32
  }
  func.func @transform_4(%arg0: i32, %arg1: i32, %arg2: i32) -> (i32, i32) {
    %c0_i32 = arith.constant 0 : i32
    %c0_i32_0 = arith.constant 0 : i32
    return %c0_i32, %arg1 : i32, i32
  }
  func.func @transform_5(%arg0: i32, %arg1: i32, %arg2: i32) -> (i32, i32) {
    %c0_i32 = arith.constant 0 : i32
    return %arg0, %arg1 : i32, i32
  }
}

</mosaic_0001>

<bundles_post_ra>
// kernel: tpu_custom_call.1
= control target key start
LH: loop header
LB: loop body
LE: loop exit
PB: predicated region body
PF: predicated region fallthrough
CT: control target
= control target key end

     0   :  { %s2528_s0 = inlined_call_operand.hbm [shape: f32[16,1024], index: 0, kind: input, shape index: {}]   ;;  %s2529_s1 = inlined_call_operand.hbm [shape: f32[512,1024], index: 1, kind: input, shape index: {}]   ;;  %s2530_s2 = inlined_call_operand.hbm [shape: f32[1,512], index: 2, kind: input, shape index: {}]   ;;  %s2531_s3 = inlined_call_operand.vmem [shape: f32[16,8], index: 3, kind: input, shape index: {}]   ;;  %s2532_s4 = inlined_call_operand.hbm [shape: f32[8,512], index: 4, kind: input, shape index: {}]   ;;  %s2533_s5 = inlined_call_operand.hbm [shape: f32[16,512], index: 5, kind: output, shape index: {}]  }
   0x1   :  { %2550 = sst [smem:[#allocation21_spill]] %s2529_s1 }
   0x2   :  { %10 = vsyncpa [#allocation4], 0 }
   0x3   :  { %11 = vsyncpa [#allocation7], 0 }
   0x4   :  { %13 = vsyncpa [#allocation7 + $0x1], 0 }
   0x5   :  { %14 = vsyncpa [#allocation10], 0 }
   0x6   :  { %16 = vsyncpa [#allocation10 + $0x1], 0 }
   0x7   :  { %17 = vsyncpa [#allocation5], 0 }
   0x8   :  { %19 = vsyncpa [#allocation5 + $0x1], 0  ;;  %s1953_s18 = smov 0   ;;  %s1955_s19 = smov 0  }
   0x9   :  { %s1957_s20 = smov 0   ;;  %s1959_s21 = smov 0  }
   0xa   :  { %s1961_s22 = smov 0   ;;  %s1963_s23 = smov 0  }
   0xb LB: > { %2551 = sst [smem:[#allocation16_spill]] %s1898_s20  ;;  %s40_s24 = sadd.s32 1, %s1906_s22  ;;  %s1910_s23 = sphi %s1963_s23, %s25_s23   ;;  %s1906_s22 = sphi %s1961_s22, %s2586_s22   ;;  %s1902_s21 = sphi %s1959_s21, %s2585_s21   ;;  %s1898_s20 = sphi %s1957_s20, %s2581_s20   ;;  %s1894_s19 = sphi %s1955_s19, %s2584_s19   ;;  %s1890_s18 = sphi %s1953_s18, %s2583_s18  }
   0xc   : > { %2552 = sst [smem:[#allocation17_spill]] %s1910_s23  ;;  %s81_s25 = sadd.s32 1, %s1898_s20 }
   0xd   : > { %p42_p0 = scmp.ge.s32.totalorder %s40_s24, 2  ;;  %p2534_p1 = scmp.ne.s32.totalorder %s1898_s20, %s1894_s19 }
   0xe   : > { %p89_p2 = scmp.eq.s32.totalorder %s1910_s23, 0  ;;  %p1644_p6 = scmp.lt.s32.totalorder %s1910_s23, 2 }
   0xf   : > { %s2588_s24 = smov (%p42_p0, %s40_s24), 0  ;;  %s252_s28 = sand.u32 1, %s1910_s23  }
  0x10   : > { %2553 = sst [smem:[#allocation18_spill]] %s2588_s24  ;;  %p1993_p3 = por %p89_p2, %p2534_p1 }
  0x11   : > { %s76_s27 = ssub.s32 %s1906_s22, %s2588_s24  ;;  %s2003_s29 = sand.u32 1, %s1898_s20  }
  0x12   : > { %p79_p5 = scmp.eq.s32.totalorder %s76_s27, 0  ;;  %s1307_s6 = sshll.u32 %s2003_s29, 11 }
  0x13   : > { %s1331_s7 = sshll.u32 %s1906_s22, 15  ;;  %s2556_s1 = sld [smem:[#allocation21_spill]] }
  0x14   : > { %s2006_s30 = scalar_select %p79_p5, %s1898_s20, %s81_s25  }
  0x15   : > { %s256_s11 = scalar_lea.vmem [#allocation6], %s1307_s6  ;;  %p2019_p7 = pnand %p1644_p6, %p1993_p3 }
  0x16   : > { %2555 = sst [smem:[#allocation19_spill]] %s2006_s30  ;;  %s266_s12 = sshll.u32 %s256_s11, 4  ;;  %s2015_s12 = int_to_ptr.vmem [resolvable:$true] %s266_s12 }
  0x17   : > { %s2557_s13 = scalar_select %p2019_p7, 1, 0 }
  0x18   : > { %s2023_s14 = scalar_lea.sflag [#allocation7], %s252_s28  ;;  %p2029_p9 = pneg %p2019_p7 }
  0x19   : > { %s2013_s10 = scalar_lea.hbm %s2556_s1, %s1331_s7  ;;  %s1707_s26 = scalar_lea.hbm %s2556_s1, 65536 }
  0x1a   : > { %s1702_s15 = scalar_lea.hbm %s2013_s10, 32768  ;;  %p1708_p12 = scmp.lt.u32.totalorder %s2013_s10, %s2556_s1 }
  0x1b   : > { %p1703_p8 = scmp.ne.s32.totalorder %s2013_s10, %s1702_s15  ;;  %p1709_p13 = scmp.lt.u32.totalorder %s1707_s26, %s1702_s15 }
  0x1c   : > { %s2558_s16 = scalar_select %p2029_p9, 1, 0 }
  0x1d   : > { %p1705_p10 = pnand %p2029_p9, %p1703_p8  ;;  %p1710_p0 = por %p1709_p13, %p1708_p12 }
  0x1e   : > { %p1711_p2 = scmp.lt.u32.totalorder %s1702_s15, %s2013_s10 }
  0x1f   : > { %p1706_p11 = pneg %p1705_p10 }
  0x20   : > { %p1712_p3 = por %p1711_p2, %p1710_p0 }
  0x22   : > { %p1713_p5 = pnand %p1712_p3, %p1706_p11 }
  0x24   : > { %1716 = shalt.err (!%p1713_p5)
}
  0x25   : > { %s1717_s28 = scalar_lea.vmem %s2015_s12, 32768  ;;  %s1912_s7 = smov [#allocation6]  }
  0x26   : > { %p1718_p6 = scmp.ne.s32.totalorder %s2015_s12, %s1717_s28  ;;  %s1722_s8 = sshll.u32 %s1912_s7, 4  ;;  %s1723_s8 = int_to_ptr.vmem [resolvable:$false] %s1722_s8 }
  0x27   : > { %s1724_s9 = scalar_lea.vmem %s1723_s8, 65536  ;;  %p1725_p4 = scmp.lt.s32.totalorder %s2015_s12, %s1723_s8 }
  0x28   : > { %p1720_p8 = pnand %p1718_p6, %p2029_p9  ;;  %p1726_p1 = scmp.lt.s32.totalorder %s1724_s9, %s1717_s28 }
  0x2a   : > { %p1721_p10 = pneg %p1720_p8  ;;  %p1727_p12 = por %p1726_p1, %p1725_p4 }
  0x2c   : > { %p1728_p13 = pnand %p1727_p12, %p1721_p10 }
  0x2e   : > { %1731 = shalt.err (!%p1728_p13)
}
  0x2f   : > { %s2535_s11 = smov 1024   ;;  %s2536_s15 = smov 64  }
  0x30   : > { %1632 = dma.hbm_to_vmem [thread:$0]  (!%p2019_p7), %s2013_s10, 32768, %s2015_s12, %s2023_s14, %s2535_s11, %s2535_s11, %s2536_s15  }
  0x31   : > { %s2057_s17 = sadd.s32 4294967295, %s1910_s23   ;;  %s1302_s25 = sadd.s32 4294967294, %s1910_s23  }
  0x32   : > { %p94_p1 = scmp.ne.s32.totalorder %s1894_s19, %s1890_s18  ;;  %p2542_p4 = scmp.eq.s32.totalorder %s2057_s17, 0 }
  0x33   : > { %p198_p11 = scmp.eq.s32.totalorder %s2057_s17, 1  ;;  %p204_p0 = scmp.eq.s32.totalorder %s1302_s25, 1 }
  0x34   : > { %p1303_p2 = scmp.ge.s32.totalorder %s1910_s23, 1  ;;  %p2067_p3 = por %p2542_p4, %p94_p1 }
  0x35   : > { %p2560_p5 = scmp.ne.s32.totalorder %s1898_s20, %s1894_s19  ;;  %p2078_p8 = por %p204_p0, %p94_p1 }
  0x36   : > { %s2559_s26 = scalar_select %p2067_p3, 1, 0 }
  0x37   : > { %p2074_p6 = por %p198_p11, %p2560_p5  ;;  %p211_p10 = scmp.lt.s32.totalorder %s1910_s23, 3 }
  0x38   : > { %s2562_s12 = scalar_select %p2078_p8, 1, 0 }
  0x39   : > { %s2561_s10 = scalar_select %p2074_p6, 1, 0 }
  0x3a   : > { %2563 = sst [smem:[#allocation20_spill]] %s2562_s12  ;;  %p2083_p12 = pnand %p1303_p2, %p211_p10 }
  0x3b   : > { %s1915_s6 = smov [#allocation3]   ;;  %s1311_s7 = sshll.u32 %s2003_s29, 1 }
  0x3c   : > { %s2564_s27 = scalar_select %p2083_p12, 1, 0 }
  0x3d   : > { %s229_s28 = sshll.u32 %s1915_s6, 4  ;;  %p1625_p13 = pneg %p2083_p12  ;;  %s2087_s28 = int_to_ptr.vmem [resolvable:$true] %s229_s28 }
  0x3e   : > { %s1332_s8 = sshll.u32 %s1906_s22, 5  ;;  %s280_s9 = scalar_lea.vmem [#allocation8], %s1311_s7 }
  0x3f   : > { %s288_s25 = sshll.u32 %s280_s9, 4  ;;  %p2095_p1 = pnand %p1625_p13, %p2542_p4  ;;  %s2104_s25 = int_to_ptr.vmem [resolvable:$true] %s288_s25 }
  0x40   : > { %s2102_s24 = scalar_lea.hbm %s2530_s2, %s1332_s8  ;;  %s1314_s6 = sshll.u32 %s2003_s29, 4 }
  0x41   : > { %s1732_s23 = scalar_lea.hbm %s2528_s0, 2048  ;;  %p1734_p0 = pneg %p2095_p1 }
  0x42   : > { %p1733_p11 = scmp.ne.s32.totalorder %s2528_s0, %s1732_s23  ;;  %p1739_p10 = scmp.lt.u32.totalorder %s1732_s23, %s2528_s0 }
  0x44   : > { %p1735_p2 = pnand %p1734_p0, %p1733_p11 }
  0x46   : > { %p1736_p5 = pneg %p1735_p2 }
  0x48   : > { %p1741_p13 = pnand %p1739_p10, %p1736_p5 }
  0x4a   : > { %1744 = shalt.err (!%p1741_p13)
}
  0x4b   : > { %s1745_s15 = scalar_lea.vmem %s2087_s28, 2048  ;;  %p1753_p3 = scmp.lt.s32.totalorder %s2087_s28, %s2087_s28 }
  0x4c   : > { %p1746_p4 = scmp.ne.s32.totalorder %s2087_s28, %s1745_s15  ;;  %p1754_p12 = scmp.lt.s32.totalorder %s1745_s15, %s1745_s15 }
  0x4e   : > { %p1748_p8 = pnand %p1746_p4, %p1734_p0  ;;  %p1755_p7 = por %p1754_p12, %p1753_p3 }
  0x50   : > { %p1749_p6 = pneg %p1748_p8 }
  0x52   : > { %p1756_p9 = pnand %p1755_p7, %p1749_p6 }
  0x54   : > { %1759 = shalt.err (!%p1756_p9)
}
  0x55   : > { %s2566_s20 = smov 64   ;;  %s2567_s30 = smov 1024  }
  0x56   : > { %1628 = dma.hbm_to_vmem [thread:$0]  (!%p2095_p1), %s2528_s0, 2048, %s2087_s28, [#allocation4], %s2567_s30, %s2567_s30, %s2566_s20  }
  0x57   : > { %s1760_s8 = scalar_lea.hbm %s2102_s24, 32  ;;  %p2568_p3 = scmp.ne.s32.totalorder %s2558_s16, 0 }
  0x58   : > { %p1761_p4 = scmp.ne.s32.totalorder %s2102_s24, %s1760_s8  ;;  %s1765_s9 = scalar_lea.hbm %s2530_s2, 64 }
  0x59   : > { %p1766_p6 = scmp.lt.u32.totalorder %s2102_s24, %s2530_s2  ;;  %p1767_p8 = scmp.lt.u32.totalorder %s1765_s9, %s1760_s8 }
  0x5a   : > { %p1763_p7 = pnand %p1761_p4, %p2568_p3  ;;  %p1769_p11 = scmp.lt.u32.totalorder %s1760_s8, %s2102_s24 }
  0x5b   : > { %p1768_p12 = por %p1767_p8, %p1766_p6 }
  0x5c   : > { %p1764_p9 = pneg %p1763_p7 }
  0x5d   : > { %p1770_p0 = por %p1769_p11, %p1768_p12 }
  0x5f   : > { %p1771_p2 = pnand %p1770_p0, %p1764_p9 }
  0x61   : > { %1774 = shalt.err (!%p1771_p2)
}
  0x62   : > { %s1775_s28 = scalar_lea.vmem %s2104_s25, 32  ;;  %s1916_s20 = smov [#allocation8]  }
  0x63   : > { %p1776_p1 = scmp.ne.s32.totalorder %s2104_s25, %s1775_s28  ;;  %s1780_s30 = sshll.u32 %s1916_s20, 4  ;;  %s1781_s30 = int_to_ptr.vmem [resolvable:$false] %s1780_s30 }
  0x64   : > { %s1782_s23 = scalar_lea.vmem %s1781_s30, 64  ;;  %p1783_p13 = scmp.lt.s32.totalorder %s2104_s25, %s1781_s30 }
  0x65   : > { %p1778_p5 = pnand %p1776_p1, %p2568_p3  ;;  %p1784_p4 = scmp.lt.s32.totalorder %s1782_s23, %s1775_s28 }
  0x67   : > { %p1779_p10 = pneg %p1778_p5  ;;  %p1785_p7 = por %p1784_p4, %p1783_p13 }
  0x69   : > { %p1786_p6 = pnand %p1785_p7, %p1779_p10 }
  0x6b   : > { %1789 = shalt.err (!%p1786_p6)
}
  0x6c   : > { %p2569_p9 = scmp.ne.s32.totalorder %s2557_s13, 0  ;;  %s1333_s12 = sshll.u32 %s1906_s22, 8 }
  0x6d   : > { %s2157_s11 = scalar_lea.hbm %s2532_s4, %s1333_s12  ;;  %s299_s9 = scalar_lea.vmem [#allocation9], %s1314_s6 }
  0x6e   : > { %1635 = dma.hbm_to_vmem [thread:$0]  (!%p2569_p9), %s2102_s24, 32, %s2104_s25, %s2023_s14  }
  0x6f   : > { %s307_s1 = sshll.u32 %s299_s9, 4  ;;  %s296_s15 = scalar_lea.sflag [#allocation10], %s2003_s29  ;;  %s308_s1 = int_to_ptr.vmem [resolvable:$true] %s307_s1 }
  0x70   : > { %s1790_s28 = scalar_lea.hbm %s2157_s11, 256  ;;  %s1795_s25 = scalar_lea.hbm %s2532_s4, 512 }
  0x71   : > { %p1791_p8 = scmp.ne.s32.totalorder %s2157_s11, %s1790_s28  ;;  %p1796_p0 = scmp.lt.u32.totalorder %s2157_s11, %s2532_s4 }
  0x72   : > { %p1797_p2 = scmp.lt.u32.totalorder %s1795_s25, %s1790_s28  ;;  %p1799_p5 = scmp.lt.u32.totalorder %s1790_s28, %s2157_s11 }
  0x73   : > { %p1793_p12 = pnand %p1791_p8, %p2568_p3 }
  0x74   : > { %p1798_p1 = por %p1797_p2, %p1796_p0 }
  0x75   : > { %p1794_p11 = pneg %p1793_p12 }
  0x76   : > { %p1800_p10 = por %p1799_p5, %p1798_p1 }
  0x78   : > { %p1801_p13 = pnand %p1800_p10, %p1794_p11 }
  0x7a   : > { %1804 = shalt.err (!%p1801_p13)
}
  0x7b   : > { %s1805_s29 = scalar_lea.vmem %s308_s1, 256  ;;  %s1917_s6 = smov [#allocation9]  }
  0x7c   : > { %p1806_p4 = scmp.ne.s32.totalorder %s308_s1, %s1805_s29  ;;  %s1810_s23 = sshll.u32 %s1917_s6, 4  ;;  %s1811_s23 = int_to_ptr.vmem [resolvable:$false] %s1810_s23 }
  0x7d   : > { %s1812_s12 = scalar_lea.vmem %s1811_s23, 512  ;;  %p1813_p8 = scmp.lt.s32.totalorder %s308_s1, %s1811_s23 }
  0x7e   : > { %p1808_p7 = pnand %p1806_p4, %p2568_p3  ;;  %p1814_p12 = scmp.lt.s32.totalorder %s1812_s12, %s1805_s29 }
  0x80   : > { %p1809_p6 = pneg %p1808_p7  ;;  %p1815_p9 = por %p1814_p12, %p1813_p8 }
  0x82   : > { %p1816_p0 = pnand %p1815_p9, %p1809_p6 }
  0x84   : > { %1819 = shalt.err (!%p1816_p0)
}
  0x85   : > { %p2570_p2 = scmp.ne.s32.totalorder %s2557_s13, 0  ;;  %p2571_p11 = scmp.ne.s32.totalorder %s2564_s27, 0 }
  0x86   : > { %p2572_p1 = scmp.eq.s32.totalorder (!%p2571_p11), %s2057_s17, 0 }
  0x87   : > { %1638 = dma.hbm_to_vmem [thread:$0]  (!%p2570_p2), %s2157_s11, 256, %s308_s1, %s296_s15  }
  0x88   : > { %316 = sbr.rel (%p2571_p11) target bundleno = 656 (0x290), region = 40 }
  0x8f   : > { %1873 = dma.done.wait (%p2572_p1), [#allocation4], 2048   ;;  %p2573_p3 = pmov %p2572_p1 }
  0x90   : > { %s322_s16 = sand.u32 1, %s2057_s17   ;;  %s2187_s8 = sand.u32 1, %s1894_s19  }
  0x91   : > { %1875 = vsyncadd (%p2573_p3), [#allocation4], 4294965248  ;;  %s1319_s7 = sshll.u32 %s2187_s8, 11  ;;  %s323_s13 = scalar_lea.sflag [#allocation7], %s322_s16 }
  0x92   : > { %s2190_s9 = scalar_lea.vmem [#allocation6], %s1319_s7  ;;  %p2574_p9 = scmp.ne.s32.totalorder %s2559_s26, 0 }
  0x94   : > { %1877 = dma.done.wait (%p2574_p9), %s323_s13, 32800  }
  0x95   : > { %1879 = vsyncadd (%p2574_p9), %s323_s13, 4294934496  ;;  %s1320_s27 = sshll.u32 %s2187_s8, 1  ;;  %s1321_s11 = sshll.u32 %s2187_s8, 4 }
  0x96   : > { %s2198_s1 = scalar_lea.vmem [#allocation8], %s1320_s27  ;;  %s341_s17 = scalar_lea.sflag [#allocation10], %s2187_s8 }
  0x97   : > { %s2201_s15 = scalar_lea.vmem [#allocation9], %s1321_s11 }
  0x98   : > { %1881 = dma.done.wait (%p2574_p9), %s341_s17, 256  }
  0x99   : > { %1883 = vsyncadd (%p2574_p9), %s341_s17, 4294967040  ;;  %v429_v0 = vld [vmem:[%s2190_s9 + $0x8] sm:$0xff]  ;;  %v428_v5 = vld [vmem:[%s2190_s9] sm:$0xff]  ;;  %vm1007_vm0 = vcmask 64512   ;;  %s1322_s25 = sshll.u32 %s2187_s8, 5  ;;  %s1334_s29 = sshll.u32 %s1902_s21, 8 }
  0x9a   : > { %v437_v1 = vld [vmem:[%s2190_s9 + $0x48] sm:$0xff]  ;;  %v436_v6 = vld [vmem:[%s2190_s9 + $0x40] sm:$0xff]  ;;  %s385_s20 = scalar_lea.vmem [#allocation11], %s1322_s25  ;;  %s2479_s12 = scalar_lea.hbm %s2533_s5, %s1334_s29 }
  0x9b   : > { %v433_v2 = vld [vmem:[%s2190_s9 + $0x28] sm:$0xff]  ;;  %v1335_v3 = vpack.c.bf16 %v437_v1, %v429_v0  ;;  %v1337_v8 = vpack.c.bf16 %v436_v6, %v428_v5  ;;  %v432_v9 = vld [vmem:[%s2190_s9 + $0x20] sm:$0xff]  ;;  %s1136_s30 = sshll.u32 %s385_s20, 4  ;;  %s1120_s21 = scalar_lea.sflag [#allocation5], %s2187_s8  ;;  %s2474_s30 = int_to_ptr.vmem [resolvable:$true] %s1136_s30 }
  0x9c   : > { %v441_v4 = vld [vmem:[%s2190_s9 + $0x68] sm:$0xff]  ;;  %v440_v10 = vld [vmem:[%s2190_s9 + $0x60] sm:$0xff]  ;;  %s1820_s16 = scalar_lea.vmem %s2474_s30, 512  ;;  %p2575_p10 = scmp.ne.s32.totalorder %s2561_s10, 0 }
  0x9d   : > { %v1463_v7 = vpack.c.bf16 %v441_v4, %v433_v2  ;;  %v445_v11 = vld [vmem:[%s2190_s9 + $0x88] sm:$0xff]  ;;  %1336 = vmatprep.subr.bf16.mxu1 %v1335_v3  ;;  %v1465_v12 = vpack.c.bf16 %v440_v10, %v432_v9  ;;  %v444_v18 = vld [vmem:[%s2190_s9 + $0x80] sm:$0xff]  ;;  %p1821_p5 = scmp.ne.s32.totalorder %s2474_s30, %s1820_s16  ;;  %s1919_s7 = smov [#allocation11]  }
  0x9e   : > { %v453_v13 = vld [vmem:[%s2190_s9 + $0xc8] sm:$0xff]  ;;  %1338 = vmatpush1.bf16.xpose.msra.mxu1 %v1337_v8  ;;  %v452_v19 = vld [vmem:[%s2190_s9 + $0xc0] sm:$0xff]  ;;  %s1824_s13 = sshll.u32 %s1919_s7, 4  ;;  %s1825_s13 = int_to_ptr.vmem [resolvable:$false] %s1824_s13 }
  0x9f   : > { %v449_v14 = vld [vmem:[%s2190_s9 + $0xa8] sm:$0xff]  ;;  %1464 = vmatprep.subr.bf16.mxu0 %v1463_v7  ;;  %v1339_v16 = vpack.c.bf16 %v453_v13, %v445_v11  ;;  %v448_v20 = vld [vmem:[%s2190_s9 + $0xa0] sm:$0xff]  ;;  %v1341_v26 = vpack.c.bf16 %v452_v19, %v444_v18  ;;  %p1822_p13 = pnand %p1821_p5, %p2575_p10  ;;  %p1827_p7 = scmp.lt.s32.totalorder %s2474_s30, %s1825_s13 }
  0xa0   : > { %v457_v15 = vld [vmem:[%s2190_s9 + $0xe8] sm:$0xff]  ;;  %1466 = vmatpush1.bf16.xpose.msra.mxu0 %v1465_v12  ;;  %v456_v21 = vld [vmem:[%s2190_s9 + $0xe0] sm:$0xff] }
  0xa1   : > { %v1467_v17 = vpack.c.bf16 %v457_v15, %v449_v14  ;;  %1340 = vmatprep.subr.bf16.mxu1 %v1339_v16  ;;  %v461_v22 = vld [vmem:[%s2190_s9 + $0x108] sm:$0xff]  ;;  %v1469_v27 = vpack.c.bf16 %v456_v21, %v448_v20  ;;  %v460_v30 = vld [vmem:[%s2190_s9 + $0x100] sm:$0xff]  ;;  %p1823_p4 = pneg %p1822_p13 }
  0xa2   : > { %v469_v23 = vld [vmem:[%s2190_s9 + $0x148] sm:$0xff]  ;;  %v468_v31 = vld [vmem:[%s2190_s9 + $0x140] sm:$0xff] }
  0xa3   : > { %1468 = vmatprep.subr.bf16.mxu0 %v1467_v17  ;;  %v465_v24 = vld [vmem:[%s2190_s9 + $0x128] sm:$0xff]  ;;  %v1343_v28 = vpack.c.bf16 %v469_v23, %v461_v22  ;;  %v464_v32 = vld [vmem:[%s2190_s9 + $0x120] sm:$0xff]  ;;  %v1345_v38 = vpack.c.bf16 %v468_v31, %v460_v30 }
  0xa4   : > { %v473_v25 = vld [vmem:[%s2190_s9 + $0x168] sm:$0xff]  ;;  %v472_v33 = vld [vmem:[%s2190_s9 + $0x160] sm:$0xff] }
  0xa5   : > { %v1471_v29 = vpack.c.bf16 %v473_v25, %v465_v24  ;;  %v477_v34 = vld [vmem:[%s2190_s9 + $0x188] sm:$0xff]  ;;  %v1473_v39 = vpack.c.bf16 %v472_v33, %v464_v32  ;;  %v476_v42 = vld [vmem:[%s2190_s9 + $0x180] sm:$0xff] }
  0xa6   : > { %1342 = vmatpush1.bf16.xpose.msra.mxu1 %v1341_v26  ;;  %v485_v35 = vld [vmem:[%s2190_s9 + $0x1c8] sm:$0xff]  ;;  %v484_v43 = vld [vmem:[%s2190_s9 + $0x1c0] sm:$0xff] }
  0xa7   : > { %1344 = vmatprep.subr.bf16.mxu1 %v1343_v28  ;;  %v481_v36 = vld [vmem:[%s2190_s9 + $0x1a8] sm:$0xff]  ;;  %v1347_v40 = vpack.c.bf16 %v485_v35, %v477_v34  ;;  %v480_v44 = vld [vmem:[%s2190_s9 + $0x1a0] sm:$0xff]  ;;  %v1349_v50 = vpack.c.bf16 %v484_v43, %v476_v42 }
  0xa8   : > { %1470 = vmatpush1.bf16.xpose.msra.mxu0 %v1469_v27  ;;  %v489_v37 = vld [vmem:[%s2190_s9 + $0x1e8] sm:$0xff]  ;;  %v488_v45 = vld [vmem:[%s2190_s9 + $0x1e0] sm:$0xff] }
  0xa9   : > { %1472 = vmatprep.subr.bf16.mxu0 %v1471_v29  ;;  %v1475_v41 = vpack.c.bf16 %v489_v37, %v481_v36  ;;  %v493_v46 = vld [vmem:[%s2190_s9 + $0x208] sm:$0xff]  ;;  %v1477_v51 = vpack.c.bf16 %v488_v45, %v480_v44  ;;  %v492_v54 = vld [vmem:[%s2190_s9 + $0x200] sm:$0xff] }
  0xaa   : > { %v501_v47 = vld [vmem:[%s2190_s9 + $0x248] sm:$0xff]  ;;  %v500_v55 = vld [vmem:[%s2190_s9 + $0x240] sm:$0xff] }
  0xab   : > { %v497_v48 = vld [vmem:[%s2190_s9 + $0x228] sm:$0xff]  ;;  %v1351_v52 = vpack.c.bf16 %v501_v47, %v493_v46  ;;  %v496_v56 = vld [vmem:[%s2190_s9 + $0x220] sm:$0xff]  ;;  %v1353_v62 = vpack.c.bf16 %v500_v55, %v492_v54 }
  0xac   : > { %v505_v49 = vld [vmem:[%s2190_s9 + $0x268] sm:$0xff]  ;;  %v504_v57 = vld [vmem:[%s2190_s9 + $0x260] sm:$0xff] }
  0xad   : > { %v1479_v53 = vpack.c.bf16 %v505_v49, %v497_v48  ;;  %v509_v58 = vld [vmem:[%s2190_s9 + $0x288] sm:$0xff]  ;;  %v1481_v63 = vpack.c.bf16 %v504_v57, %v496_v56  ;;  %v508_v2 = vld [vmem:[%s2190_s9 + $0x280] sm:$0xff] }
  0xae   : > { %1346 = vmatpush1.bf16.xpose.msra.mxu1 %v1345_v38  ;;  %v517_v59 = vld [vmem:[%s2190_s9 + $0x2c8] sm:$0xff]  ;;  %v516_v3 = vld [vmem:[%s2190_s9 + $0x2c0] sm:$0xff] }
  0xaf   : > { %1348 = vmatprep.subr.bf16.mxu1 %v1347_v40  ;;  %v513_v60 = vld [vmem:[%s2190_s9 + $0x2a8] sm:$0xff]  ;;  %v1355_v0 = vpack.c.bf16 %v517_v59, %v509_v58  ;;  %v512_v4 = vld [vmem:[%s2190_s9 + $0x2a0] sm:$0xff]  ;;  %v1357_v10 = vpack.c.bf16 %v516_v3, %v508_v2 }
  0xb0   : > { %1474 = vmatpush1.bf16.xpose.msra.mxu0 %v1473_v39  ;;  %v521_v61 = vld [vmem:[%s2190_s9 + $0x2e8] sm:$0xff]  ;;  %v520_v5 = vld [vmem:[%s2190_s9 + $0x2e0] sm:$0xff] }
  0xb1   : > { %1476 = vmatprep.subr.bf16.mxu0 %v1475_v41  ;;  %v1483_v1 = vpack.c.bf16 %v521_v61, %v513_v60  ;;  %v525_v6 = vld [vmem:[%s2190_s9 + $0x308] sm:$0xff]  ;;  %v1485_v11 = vpack.c.bf16 %v520_v5, %v512_v4  ;;  %v524_v16 = vld [vmem:[%s2190_s9 + $0x300] sm:$0xff] }
  0xb2   : > { %v533_v7 = vld [vmem:[%s2190_s9 + $0x348] sm:$0xff]  ;;  %v532_v17 = vld [vmem:[%s2190_s9 + $0x340] sm:$0xff] }
  0xb3   : > { %v529_v8 = vld [vmem:[%s2190_s9 + $0x328] sm:$0xff]  ;;  %v1359_v12 = vpack.c.bf16 %v533_v7, %v525_v6  ;;  %v528_v18 = vld [vmem:[%s2190_s9 + $0x320] sm:$0xff]  ;;  %v1361_v24 = vpack.c.bf16 %v532_v17, %v524_v16 }
  0xb4   : > { %v537_v9 = vld [vmem:[%s2190_s9 + $0x368] sm:$0xff]  ;;  %v536_v19 = vld [vmem:[%s2190_s9 + $0x360] sm:$0xff] }
  0xb5   : > { %v1487_v13 = vpack.c.bf16 %v537_v9, %v529_v8  ;;  %v413_v14 = vld [vmem:[#allocation3 + $0x8] sm:$0xff]  ;;  %v1489_v25 = vpack.c.bf16 %v536_v19, %v528_v18  ;;  %v540_v28 = vld [vmem:[%s2190_s9 + $0x380] sm:$0xff] }
  0xb6   : > { %1350 = vmatpush1.bf16.xpose.msra.mxu1 %v1349_v50  ;;  %748 = vmatprep.mubr.f32.mxu1 %v413_v14  ;;  %v417_v15 = vld [vmem:[#allocation3 + $0x28] sm:$0xff]  ;;  %v548_v29 = vld [vmem:[%s2190_s9 + $0x3c0] sm:$0xff] }
  0xb7   : > { %1352 = vmatprep.subr.bf16.mxu1 %v1351_v52  ;;  %902 = vmatprep.mubr.f32.mxu0 %v417_v15  ;;  %v541_v20 = vld [vmem:[%s2190_s9 + $0x388] sm:$0xff]  ;;  %v544_v30 = vld [vmem:[%s2190_s9 + $0x3a0] sm:$0xff]  ;;  %v1365_v36 = vpack.c.bf16 %v548_v29, %v540_v28 }
  0xb8   : > { %1478 = vmatpush1.bf16.xpose.msra.mxu0 %v1477_v51  ;;  %v549_v21 = vld [vmem:[%s2190_s9 + $0x3c8] sm:$0xff]  ;;  %v552_v31 = vld [vmem:[%s2190_s9 + $0x3e0] sm:$0xff] }
  0xb9   : > { %1480 = vmatprep.subr.bf16.mxu0 %v1479_v53  ;;  %v545_v22 = vld [vmem:[%s2190_s9 + $0x3a8] sm:$0xff]  ;;  %v1363_v26 = vpack.c.bf16 %v549_v21, %v541_v20  ;;  %v1493_v37 = vpack.c.bf16 %v552_v31, %v544_v30  ;;  %v556_v40 = vld [vmem:[%s2190_s9 + $0x400] sm:$0xff] }
  0xba   : > { %v553_v23 = vld [vmem:[%s2190_s9 + $0x3e8] sm:$0xff]  ;;  %v564_v41 = vld [vmem:[%s2190_s9 + $0x440] sm:$0xff] }
  0xbb   : > { %v1491_v27 = vpack.c.bf16 %v553_v23, %v545_v22  ;;  %v557_v32 = vld [vmem:[%s2190_s9 + $0x408] sm:$0xff]  ;;  %v560_v42 = vld [vmem:[%s2190_s9 + $0x420] sm:$0xff]  ;;  %v1369_v48 = vpack.c.bf16 %v564_v41, %v556_v40 }
  0xbc   : > { %v565_v33 = vld [vmem:[%s2190_s9 + $0x448] sm:$0xff]  ;;  %v568_v43 = vld [vmem:[%s2190_s9 + $0x460] sm:$0xff] }
  0xbd   : > { %v561_v34 = vld [vmem:[%s2190_s9 + $0x428] sm:$0xff]  ;;  %v1367_v38 = vpack.c.bf16 %v565_v33, %v557_v32  ;;  %v1497_v49 = vpack.c.bf16 %v568_v43, %v560_v42  ;;  %v572_v52 = vld [vmem:[%s2190_s9 + $0x480] sm:$0xff] }
  0xbe   : > { %1354 = vmatpush1.bf16.xpose.msra.mxu1 %v1353_v62  ;;  %v569_v35 = vld [vmem:[%s2190_s9 + $0x468] sm:$0xff]  ;;  %v580_v53 = vld [vmem:[%s2190_s9 + $0x4c0] sm:$0xff] }
  0xbf   : > { %1356 = vmatprep.subr.bf16.mxu1 %v1355_v0  ;;  %v1495_v39 = vpack.c.bf16 %v569_v35, %v561_v34  ;;  %v573_v44 = vld [vmem:[%s2190_s9 + $0x488] sm:$0xff]  ;;  %v576_v54 = vld [vmem:[%s2190_s9 + $0x4a0] sm:$0xff]  ;;  %v1373_v60 = vpack.c.bf16 %v580_v53, %v572_v52 }
  0xc0   : > { %1482 = vmatpush1.bf16.xpose.msra.mxu0 %v1481_v63  ;;  %v581_v45 = vld [vmem:[%s2190_s9 + $0x4c8] sm:$0xff]  ;;  %v584_v55 = vld [vmem:[%s2190_s9 + $0x4e0] sm:$0xff] }
  0xc1   : > { %1484 = vmatprep.subr.bf16.mxu0 %v1483_v1  ;;  %v577_v46 = vld [vmem:[%s2190_s9 + $0x4a8] sm:$0xff]  ;;  %v1371_v50 = vpack.c.bf16 %v581_v45, %v573_v44  ;;  %v1501_v61 = vpack.c.bf16 %v584_v55, %v576_v54  ;;  %v588_v0 = vld [vmem:[%s2190_s9 + $0x500] sm:$0xff] }
  0xc2   : > { %v585_v47 = vld [vmem:[%s2190_s9 + $0x4e8] sm:$0xff]  ;;  %v596_v1 = vld [vmem:[%s2190_s9 + $0x540] sm:$0xff] }
  0xc3   : > { %v1499_v51 = vpack.c.bf16 %v585_v47, %v577_v46  ;;  %v589_v56 = vld [vmem:[%s2190_s9 + $0x508] sm:$0xff]  ;;  %v592_v2 = vld [vmem:[%s2190_s9 + $0x520] sm:$0xff]  ;;  %v1377_v8 = vpack.c.bf16 %v596_v1, %v588_v0  ;;  %v431_v0 = vld [vmem:[%s2190_s9 + $0x18] sm:$0xff] }
  0xc4   : > { %v597_v57 = vld [vmem:[%s2190_s9 + $0x548] sm:$0xff]  ;;  %v600_v3 = vld [vmem:[%s2190_s9 + $0x560] sm:$0xff]  ;;  %v439_v1 = vld [vmem:[%s2190_s9 + $0x58] sm:$0xff] }
  0xc5   : > { %v593_v58 = vld [vmem:[%s2190_s9 + $0x528] sm:$0xff]  ;;  %v1375_v62 = vpack.c.bf16 %v597_v57, %v589_v56  ;;  %v1505_v9 = vpack.c.bf16 %v600_v3, %v592_v2  ;;  %v608_v14 = vld [vmem:[%s2190_s9 + $0x5a0] sm:$0xff]  ;;  %v435_v2 = vld [vmem:[%s2190_s9 + $0x38] sm:$0xff] }
  0xc6   : > { %1358 = vmatpush1.bf16.xpose.msra.mxu1 %v1357_v10  ;;  %v601_v59 = vld [vmem:[%s2190_s9 + $0x568] sm:$0xff]  ;;  %v616_v15 = vld [vmem:[%s2190_s9 + $0x5e0] sm:$0xff]  ;;  %v443_v3 = vld [vmem:[%s2190_s9 + $0x78] sm:$0xff] }
  0xc7   : > { %1360 = vmatprep.subr.bf16.mxu1 %v1359_v12  ;;  %v1503_v63 = vpack.c.bf16 %v601_v59, %v593_v58  ;;  %v605_v4 = vld [vmem:[%s2190_s9 + $0x588] sm:$0xff]  ;;  %v604_v12 = vld [vmem:[%s2190_s9 + $0x580] sm:$0xff]  ;;  %v1509_v21 = vpack.c.bf16 %v616_v15, %v608_v14  ;;  %v451_v14 = vld [vmem:[%s2190_s9 + $0xb8] sm:$0xff] }
  0xc8   : > { %1486 = vmatpush1.bf16.xpose.msra.mxu0 %v1485_v11  ;;  %v613_v5 = vld [vmem:[%s2190_s9 + $0x5c8] sm:$0xff]  ;;  %v459_v15 = vld [vmem:[%s2190_s9 + $0xf8] sm:$0xff] }
  0xc9   : > { %1488 = vmatprep.subr.bf16.mxu0 %v1487_v13  ;;  %v609_v6 = vld [vmem:[%s2190_s9 + $0x5a8] sm:$0xff]  ;;  %v1379_v10 = vpack.c.bf16 %v613_v5, %v605_v4  ;;  %v612_v13 = vld [vmem:[%s2190_s9 + $0x5c0] sm:$0xff] }
  0xca   : > { %v617_v7 = vld [vmem:[%s2190_s9 + $0x5e8] sm:$0xff]  ;;  %v1381_v20 = vpack.c.bf16 %v612_v13, %v604_v12  ;;  %v447_v12 = vld [vmem:[%s2190_s9 + $0x98] sm:$0xff] }
  0xcb   : > { %v1507_v11 = vpack.c.bf16 %v617_v7, %v609_v6  ;;  %v621_v16 = vld [vmem:[%s2190_s9 + $0x608] sm:$0xff]  ;;  %v1399_v6 = vpack.c.bf16 %v439_v1, %v431_v0  ;;  %v1527_v7 = vpack.c.bf16 %v443_v3, %v435_v2  ;;  %v455_v13 = vld [vmem:[%s2190_s9 + $0xd8] sm:$0xff]  ;;  %v494_v0 = vld [vmem:[%s2190_s9 + $0x210] sm:$0xff] }
  0xcc   : > { %v629_v17 = vld [vmem:[%s2190_s9 + $0x648] sm:$0xff]  ;;  %v502_v1 = vld [vmem:[%s2190_s9 + $0x250] sm:$0xff] }
  0xcd   : > { %v625_v18 = vld [vmem:[%s2190_s9 + $0x628] sm:$0xff]  ;;  %v1383_v22 = vpack.c.bf16 %v629_v17, %v621_v16  ;;  %v412_v16 = vld [vmem:[#allocation3] sm:$0xff]  ;;  %v498_v2 = vld [vmem:[%s2190_s9 + $0x230] sm:$0xff] }
  0xce   : > { %1362 = vmatpush1.bf16.xpose.msra.mxu1 %v1361_v24  ;;  %v633_v19 = vld [vmem:[%s2190_s9 + $0x668] sm:$0xff]  ;;  %v620_v24 = vld [vmem:[%s2190_s9 + $0x600] sm:$0xff]  ;;  %v506_v3 = vld [vmem:[%s2190_s9 + $0x270] sm:$0xff] }
  0xcf   : > { %1364 = vmatprep.subr.bf16.mxu1 %v1363_v26  ;;  %v1511_v23 = vpack.c.bf16 %v633_v19, %v625_v18  ;;  %v624_v26 = vld [vmem:[%s2190_s9 + $0x620] sm:$0xff]  ;;  %v637_v28 = vld [vmem:[%s2190_s9 + $0x688] sm:$0xff] }
  0xd0   : > { %1490 = vmatpush1.bf16.xpose.msra.mxu0 %v1489_v25  ;;  %v628_v25 = vld [vmem:[%s2190_s9 + $0x640] sm:$0xff]  ;;  %v645_v29 = vld [vmem:[%s2190_s9 + $0x6c8] sm:$0xff] }
  0xd1   : > { %1492 = vmatprep.subr.bf16.mxu0 %v1491_v27  ;;  %v632_v27 = vld [vmem:[%s2190_s9 + $0x660] sm:$0xff]  ;;  %v641_v30 = vld [vmem:[%s2190_s9 + $0x6a8] sm:$0xff]  ;;  %v1385_v32 = vpack.c.bf16 %v628_v25, %v620_v24  ;;  %v1387_v34 = vpack.c.bf16 %v645_v29, %v637_v28  ;;  %v450_v25 = vld [vmem:[%s2190_s9 + $0xb0] sm:$0xff] }
  0xd2   : > { %v649_v31 = vld [vmem:[%s2190_s9 + $0x6e8] sm:$0xff]  ;;  %v1513_v33 = vpack.c.bf16 %v632_v27, %v624_v26  ;;  %v416_v18 = vld [vmem:[#allocation3 + $0x20] sm:$0xff]  ;;  %v458_v28 = vld [vmem:[%s2190_s9 + $0xf0] sm:$0xff] }
  0xd3   : > { %v1515_v35 = vpack.c.bf16 %v649_v31, %v641_v30  ;;  %v653_v40 = vld [vmem:[%s2190_s9 + $0x708] sm:$0xff]  ;;  %v420_v27 = vld [vmem:[#allocation3 + $0x40] sm:$0xff]  ;;  %v415_v30 = vld [vmem:[#allocation3 + $0x18] sm:$0xff] }
  0xd4   : > { %v661_v41 = vld [vmem:[%s2190_s9 + $0x748] sm:$0xff]  ;;  %v424_v29 = vld [vmem:[#allocation3 + $0x60] sm:$0xff]  ;;  %v463_v31 = vld [vmem:[%s2190_s9 + $0x118] sm:$0xff] }
  0xd5   : > { %v657_v42 = vld [vmem:[%s2190_s9 + $0x728] sm:$0xff]  ;;  %v1391_v46 = vpack.c.bf16 %v661_v41, %v653_v40  ;;  %v462_v40 = vld [vmem:[%s2190_s9 + $0x110] sm:$0xff] }
  0xd6   : > { %1366 = vmatpush1.bf16.xpose.msra.mxu1 %v1365_v36  ;;  %v636_v36 = vld [vmem:[%s2190_s9 + $0x680] sm:$0xff]  ;;  %v665_v43 = vld [vmem:[%s2190_s9 + $0x768] sm:$0xff]  ;;  %v470_v41 = vld [vmem:[%s2190_s9 + $0x150] sm:$0xff] }
  0xd7   : > { %1368 = vmatprep.subr.bf16.mxu1 %v1367_v38  ;;  %v640_v38 = vld [vmem:[%s2190_s9 + $0x6a0] sm:$0xff]  ;;  %v1519_v47 = vpack.c.bf16 %v665_v43, %v657_v42  ;;  %v669_v52 = vld [vmem:[%s2190_s9 + $0x788] sm:$0xff]  ;;  %v466_v42 = vld [vmem:[%s2190_s9 + $0x130] sm:$0xff] }
  0xd8   : > { %1494 = vmatpush1.bf16.xpose.msra.mxu0 %v1493_v37  ;;  %v644_v37 = vld [vmem:[%s2190_s9 + $0x6c0] sm:$0xff]  ;;  %v677_v53 = vld [vmem:[%s2190_s9 + $0x7c8] sm:$0xff]  ;;  %v474_v43 = vld [vmem:[%s2190_s9 + $0x170] sm:$0xff] }
  0xd9   : > { %1496 = vmatprep.subr.bf16.mxu0 %v1495_v39  ;;  %v648_v39 = vld [vmem:[%s2190_s9 + $0x6e0] sm:$0xff]  ;;  %v1389_v44 = vpack.c.bf16 %v644_v37, %v636_v36  ;;  %v673_v54 = vld [vmem:[%s2190_s9 + $0x7a8] sm:$0xff]  ;;  %v1395_v58 = vpack.c.bf16 %v677_v53, %v669_v52  ;;  %v1533_v37 = vpack.c.bf16 %v458_v28, %v450_v25  ;;  %v478_v52 = vld [vmem:[%s2190_s9 + $0x190] sm:$0xff] }
  0xda   : > { %v1517_v45 = vpack.c.bf16 %v648_v39, %v640_v38  ;;  %v681_v55 = vld [vmem:[%s2190_s9 + $0x7e8] sm:$0xff]  ;;  %v486_v53 = vld [vmem:[%s2190_s9 + $0x1d0] sm:$0xff]  ;;  %v543_v28 = vld [vmem:[%s2190_s9 + $0x398] sm:$0xff] }
  0xdb   : > { %v1523_v59 = vpack.c.bf16 %v681_v55, %v673_v54  ;;  %v421_v24 = vld [vmem:[#allocation3 + $0x48] sm:$0xff]  ;;  %v482_v54 = vld [vmem:[%s2190_s9 + $0x1b0] sm:$0xff] }
  0xdc   : > { %v425_v26 = vld [vmem:[#allocation3 + $0x68] sm:$0xff]  ;;  %v490_v55 = vld [vmem:[%s2190_s9 + $0x1f0] sm:$0xff] }
  0xdd   : > { %v534_v25 = vld [vmem:[%s2190_s9 + $0x350] sm:$0xff] }
  0xde   : > { %1370 = vmatpush1.bf16.xpose.msra.mxu1 %v1369_v48  ;;  %v652_v48 = vld [vmem:[%s2190_s9 + $0x700] sm:$0xff] }
  0xdf   : > { %1372 = vmatprep.subr.bf16.mxu1 %v1371_v50  ;;  %v656_v50 = vld [vmem:[%s2190_s9 + $0x720] sm:$0xff] }
  0xe0   : > { %1498 = vmatpush1.bf16.xpose.msra.mxu0 %v1497_v49  ;;  %v660_v49 = vld [vmem:[%s2190_s9 + $0x740] sm:$0xff] }
  0xe1   : > { %1500 = vmatprep.subr.bf16.mxu0 %v1499_v51  ;;  %v664_v51 = vld [vmem:[%s2190_s9 + $0x760] sm:$0xff]  ;;  %v1393_v56 = vpack.c.bf16 %v660_v49, %v652_v48  ;;  %v1409_v48 = vpack.c.bf16 %v470_v41, %v462_v40  ;;  %v1537_v49 = vpack.c.bf16 %v474_v43, %v466_v42  ;;  %v559_v40 = vld [vmem:[%s2190_s9 + $0x418] sm:$0xff] }
  0xe2   : > { %v1521_v57 = vpack.c.bf16 %v664_v51, %v656_v50  ;;  %v567_v41 = vld [vmem:[%s2190_s9 + $0x458] sm:$0xff] }
  0xe3   : > { %v563_v42 = vld [vmem:[%s2190_s9 + $0x438] sm:$0xff] }
  0xe4   : > { %v571_v43 = vld [vmem:[%s2190_s9 + $0x478] sm:$0xff] }
  0xe6   : > { %1374 = vmatpush1.bf16.xpose.msra.mxu1 %v1373_v60  ;;  %v668_v60 = vld [vmem:[%s2190_s9 + $0x780] sm:$0xff] }
  0xe7   : > { %1376 = vmatprep.subr.bf16.mxu1 %v1375_v62  ;;  %v672_v62 = vld [vmem:[%s2190_s9 + $0x7a0] sm:$0xff] }
  0xe8   : > { %1502 = vmatpush1.bf16.xpose.msra.mxu0 %v1501_v61  ;;  %v676_v61 = vld [vmem:[%s2190_s9 + $0x7c0] sm:$0xff] }
  0xe9   : > { %1504 = vmatprep.subr.bf16.mxu0 %v1503_v63  ;;  %v680_v63 = vld [vmem:[%s2190_s9 + $0x7e0] sm:$0xff]  ;;  %v1397_v4 = vpack.c.bf16 %v676_v61, %v668_v60  ;;  %v1413_v60 = vpack.c.bf16 %v486_v53, %v478_v52  ;;  %v1541_v61 = vpack.c.bf16 %v490_v55, %v482_v54  ;;  %v575_v52 = vld [vmem:[%s2190_s9 + $0x498] sm:$0xff] }
  0xea   : > { %v1525_v5 = vpack.c.bf16 %v680_v63, %v672_v62  ;;  %v583_v53 = vld [vmem:[%s2190_s9 + $0x4d8] sm:$0xff] }
  0xeb   : > { %v579_v54 = vld [vmem:[%s2190_s9 + $0x4b8] sm:$0xff] }
  0xec   : > { %v587_v55 = vld [vmem:[%s2190_s9 + $0x4f8] sm:$0xff] }
  0xee   : > { %1378 = vmatpush1.bf16.xpose.msra.mxu1 %v1377_v8  ;;  %v430_v8 = vld [vmem:[%s2190_s9 + $0x10] sm:$0xff] }
  0xef   : > { %1380 = vmatprep.subr.bf16.mxu1 %v1379_v10  ;;  %v434_v10 = vld [vmem:[%s2190_s9 + $0x30] sm:$0xff] }
  0xf0   : > { %1506 = vmatpush1.bf16.xpose.msra.mxu0 %v1505_v9  ;;  %v438_v9 = vld [vmem:[%s2190_s9 + $0x50] sm:$0xff] }
  0xf1   : > { %1508 = vmatprep.subr.bf16.mxu0 %v1507_v11  ;;  %v442_v11 = vld [vmem:[%s2190_s9 + $0x70] sm:$0xff]  ;;  %v1401_v17 = vpack.c.bf16 %v438_v9, %v430_v8  ;;  %v1417_v8 = vpack.c.bf16 %v502_v1, %v494_v0  ;;  %v1545_v9 = vpack.c.bf16 %v506_v3, %v498_v2  ;;  %v591_v0 = vld [vmem:[%s2190_s9 + $0x518] sm:$0xff] }
  0xf2   : > { %v1529_v19 = vpack.c.bf16 %v442_v11, %v434_v10  ;;  %v599_v1 = vld [vmem:[%s2190_s9 + $0x558] sm:$0xff] }
  0xf3   : > { %v595_v2 = vld [vmem:[%s2190_s9 + $0x538] sm:$0xff] }
  0xf4   : > { %v603_v3 = vld [vmem:[%s2190_s9 + $0x578] sm:$0xff] }
  0xf6   : > { %1382 = vmatpush1.bf16.xpose.msra.mxu1 %v1381_v20  ;;  %v1403_v20 = vpack.c.bf16 %v455_v13, %v447_v12  ;;  %v510_v12 = vld [vmem:[%s2190_s9 + $0x290] sm:$0xff] }
  0xf7   : > { %1384 = vmatprep.subr.bf16.mxu1 %v1383_v22  ;;  %v446_v22 = vld [vmem:[%s2190_s9 + $0x90] sm:$0xff] }
  0xf8   : > { %1510 = vmatpush1.bf16.xpose.msra.mxu0 %v1509_v21  ;;  %v1531_v21 = vpack.c.bf16 %v459_v15, %v451_v14  ;;  %v518_v13 = vld [vmem:[%s2190_s9 + $0x2d0] sm:$0xff] }
  0xf9   : > { %1512 = vmatprep.subr.bf16.mxu0 %v1511_v23  ;;  %v454_v23 = vld [vmem:[%s2190_s9 + $0xd0] sm:$0xff] }
  0xfa   : > { %v1405_v36 = vpack.c.bf16 %v454_v23, %v446_v22  ;;  %v514_v14 = vld [vmem:[%s2190_s9 + $0x2b0] sm:$0xff] }
  0xfb   : > { %v522_v15 = vld [vmem:[%s2190_s9 + $0x2f0] sm:$0xff] }
  0xfe   : > { %1386 = vmatpush1.bf16.xpose.msra.mxu1 %v1385_v32  ;;  %v471_v32 = vld [vmem:[%s2190_s9 + $0x158] sm:$0xff] }
  0xff   : > { %1388 = vmatprep.subr.bf16.mxu1 %v1387_v34  ;;  %v467_v34 = vld [vmem:[%s2190_s9 + $0x138] sm:$0xff]  ;;  %v1407_v38 = vpack.c.bf16 %v471_v32, %v463_v31 }
 0x100   : > { %1514 = vmatpush1.bf16.xpose.msra.mxu0 %v1513_v33  ;;  %v419_v33 = vld [vmem:[#allocation3 + $0x38] sm:$0xff] }
 0x101   : > { %1516 = vmatprep.subr.bf16.mxu0 %v1515_v35  ;;  %v475_v35 = vld [vmem:[%s2190_s9 + $0x178] sm:$0xff] }
 0x102   : > { %v1535_v39 = vpack.c.bf16 %v475_v35, %v467_v34  ;;  %v555_v31 = vld [vmem:[%s2190_s9 + $0x3f8] sm:$0xff] }
 0x106   : > { %1390 = vmatpush1.bf16.xpose.msra.mxu1 %v1389_v44  ;;  %v479_v44 = vld [vmem:[%s2190_s9 + $0x198] sm:$0xff] }
 0x107   : > { %1392 = vmatprep.subr.bf16.mxu1 %v1391_v46  ;;  %v483_v46 = vld [vmem:[%s2190_s9 + $0x1b8] sm:$0xff] }
 0x108   : > { %1518 = vmatpush1.bf16.xpose.msra.mxu0 %v1517_v45  ;;  %v487_v45 = vld [vmem:[%s2190_s9 + $0x1d8] sm:$0xff] }
 0x109   : > { %1520 = vmatprep.subr.bf16.mxu0 %v1519_v47  ;;  %v491_v47 = vld [vmem:[%s2190_s9 + $0x1f8] sm:$0xff]  ;;  %v1411_v50 = vpack.c.bf16 %v487_v45, %v479_v44 }
 0x10a   : > { %v1539_v51 = vpack.c.bf16 %v491_v47, %v483_v46  ;;  %v1431_v46 = vpack.c.bf16 %v567_v41, %v559_v40  ;;  %v1559_v47 = vpack.c.bf16 %v571_v43, %v563_v42 }
 0x10e   : > { %1394 = vmatpush1.bf16.xpose.msra.mxu1 %v1393_v56  ;;  %v495_v56 = vld [vmem:[%s2190_s9 + $0x218] sm:$0xff] }
 0x10f   : > { %1396 = vmatprep.subr.bf16.mxu1 %v1395_v58  ;;  %v499_v58 = vld [vmem:[%s2190_s9 + $0x238] sm:$0xff] }
 0x110   : > { %1522 = vmatpush1.bf16.xpose.msra.mxu0 %v1521_v57  ;;  %v503_v57 = vld [vmem:[%s2190_s9 + $0x258] sm:$0xff] }
 0x111   : > { %1524 = vmatprep.subr.bf16.mxu0 %v1523_v59  ;;  %v507_v59 = vld [vmem:[%s2190_s9 + $0x278] sm:$0xff]  ;;  %v1415_v62 = vpack.c.bf16 %v503_v57, %v495_v56 }
 0x112   : > { %v1543_v63 = vpack.c.bf16 %v507_v59, %v499_v58  ;;  %v1435_v58 = vpack.c.bf16 %v583_v53, %v575_v52  ;;  %v1563_v59 = vpack.c.bf16 %v587_v55, %v579_v54 }
 0x116   : > { %1398 = vmatpush1.bf16.xpose.msra.mxu1 %v1397_v4  ;;  %v511_v4 = vld [vmem:[%s2190_s9 + $0x298] sm:$0xff] }
 0x117   : > { %1400 = vmatprep.subr.bf16.mxu1 %v1399_v6  ;;  %v515_v6 = vld [vmem:[%s2190_s9 + $0x2b8] sm:$0xff] }
 0x118   : > { %1526 = vmatpush1.bf16.xpose.msra.mxu0 %v1525_v5  ;;  %v519_v5 = vld [vmem:[%s2190_s9 + $0x2d8] sm:$0xff] }
 0x119   : > { %1528 = vmatprep.subr.bf16.mxu0 %v1527_v7  ;;  %v523_v7 = vld [vmem:[%s2190_s9 + $0x2f8] sm:$0xff]  ;;  %v1419_v10 = vpack.c.bf16 %v519_v5, %v511_v4 }
 0x11a   : > { %v1547_v11 = vpack.c.bf16 %v523_v7, %v515_v6  ;;  %v1439_v6 = vpack.c.bf16 %v599_v1, %v591_v0  ;;  %v1567_v7 = vpack.c.bf16 %v603_v3, %v595_v2 }
 0x11d   : > { %749 = vmatmul.mubr.f32.vlgmr.msra.gmra.mrb[0].mxu1 %v412_v16  ;;  %v527_v16 = vld [vmem:[%s2190_s9 + $0x318] sm:$0xff] }
 0x11e   : > { %1402 = vmatpush1.bf16.xpose.msra.mxu1 %v1401_v17  ;;  %754 = vmatprep.mubr.f32.mxu1 %v421_v24  ;;  %v535_v17 = vld [vmem:[%s2190_s9 + $0x358] sm:$0xff]  ;;  %v526_v24 = vld [vmem:[%s2190_s9 + $0x310] sm:$0xff] }
 0x11f   : > { %903 = vmatmul.mubr.f32.vlgmr.msra.gmra.mrb[0].mxu0 %v416_v18  ;;  %1404 = vmatprep.subr.bf16.mxu1 %v1403_v20  ;;  %v531_v18 = vld [vmem:[%s2190_s9 + $0x338] sm:$0xff]  ;;  %v1421_v20 = vpack.c.bf16 %v518_v13, %v510_v12  ;;  %v1423_v22 = vpack.c.bf16 %v535_v17, %v527_v16  ;;  %v1425_v32 = vpack.c.bf16 %v534_v25, %v526_v24 }
 0x120   : > { %1530 = vmatpush1.bf16.xpose.msra.mxu0 %v1529_v19  ;;  %908 = vmatprep.mubr.f32.mxu0 %v425_v26  ;;  %v539_v19 = vld [vmem:[%s2190_s9 + $0x378] sm:$0xff]  ;;  %v530_v26 = vld [vmem:[%s2190_s9 + $0x330] sm:$0xff] }
 0x121   : > { %1532 = vmatprep.subr.bf16.mxu0 %v1531_v21  ;;  %755 = vmatmul.mubr.f32.gmra.mrb[2].mxu1 %v420_v27  ;;  %v1549_v21 = vpack.c.bf16 %v522_v15, %v514_v14  ;;  %v1551_v23 = vpack.c.bf16 %v539_v19, %v531_v18  ;;  %v538_v27 = vld [vmem:[%s2190_s9 + $0x370] sm:$0xff]  ;;  %v607_v12 = vld [vmem:[%s2190_s9 + $0x598] sm:$0xff] }
 0x122   : > { %825 = vmatprep.mubr.f32.mxu1 %v415_v30  ;;  %v547_v30 = vld [vmem:[%s2190_s9 + $0x3b8] sm:$0xff] }
 0x123   : > { %909 = vmatmul.mubr.f32.gmra.mrb[2].mxu0 %v424_v29  ;;  %v551_v29 = vld [vmem:[%s2190_s9 + $0x3d8] sm:$0xff]  ;;  %v1555_v35 = vpack.c.bf16 %v555_v31, %v547_v30 }
 0x124   : > { %979 = vmatprep.mubr.f32.mxu0 %v419_v33  ;;  %v1553_v33 = vpack.c.bf16 %v538_v27, %v530_v26  ;;  %v1427_v34 = vpack.c.bf16 %v551_v29, %v543_v28  ;;  %v615_v13 = vld [vmem:[%s2190_s9 + $0x5d8] sm:$0xff] }
 0x125   : > { %v611_v14 = vld [vmem:[%s2190_s9 + $0x5b8] sm:$0xff]  ;;  %v1443_v18 = vpack.c.bf16 %v615_v13, %v607_v12  ;;  %v418_v12 = vld [vmem:[#allocation3 + $0x30] sm:$0xff] }
 0x126   : > { %1406 = vmatpush1.bf16.xpose.msra.mxu1 %v1405_v36  ;;  %v542_v36 = vld [vmem:[%s2190_s9 + $0x390] sm:$0xff]  ;;  %v619_v15 = vld [vmem:[%s2190_s9 + $0x5f8] sm:$0xff] }
 0x127   : > { %1408 = vmatprep.subr.bf16.mxu1 %v1407_v38  ;;  %v546_v38 = vld [vmem:[%s2190_s9 + $0x3b0] sm:$0xff]  ;;  %v1571_v19 = vpack.c.bf16 %v619_v15, %v611_v14  ;;  %v623_v24 = vld [vmem:[%s2190_s9 + $0x618] sm:$0xff] }
 0x128   : > { %1534 = vmatpush1.bf16.xpose.msra.mxu0 %v1533_v37  ;;  %v550_v37 = vld [vmem:[%s2190_s9 + $0x3d0] sm:$0xff]  ;;  %v631_v25 = vld [vmem:[%s2190_s9 + $0x658] sm:$0xff] }
 0x129   : > { %1536 = vmatprep.subr.bf16.mxu0 %v1535_v39  ;;  %v554_v39 = vld [vmem:[%s2190_s9 + $0x3f0] sm:$0xff]  ;;  %v1429_v44 = vpack.c.bf16 %v550_v37, %v542_v36  ;;  %v627_v26 = vld [vmem:[%s2190_s9 + $0x638] sm:$0xff]  ;;  %v1447_v30 = vpack.c.bf16 %v631_v25, %v623_v24 }
 0x12a   : > { %v1557_v45 = vpack.c.bf16 %v554_v39, %v546_v38  ;;  %v635_v27 = vld [vmem:[%s2190_s9 + $0x678] sm:$0xff] }
 0x12b   : > { %v1575_v31 = vpack.c.bf16 %v635_v27, %v627_v26  ;;  %v639_v36 = vld [vmem:[%s2190_s9 + $0x698] sm:$0xff]  ;;  %v1095_v27 = vld [vmem:[%s2198_s1] sm:$0x3] }
 0x12c   : > { %v647_v37 = vld [vmem:[%s2190_s9 + $0x6d8] sm:$0xff] }
 0x12d   : > { %v643_v38 = vld [vmem:[%s2190_s9 + $0x6b8] sm:$0xff]  ;;  %v1451_v42 = vpack.c.bf16 %v647_v37, %v639_v36 }
 0x12e   : > { %1410 = vmatpush1.bf16.xpose.msra.mxu1 %v1409_v48  ;;  %v558_v48 = vld [vmem:[%s2190_s9 + $0x410] sm:$0xff]  ;;  %v651_v39 = vld [vmem:[%s2190_s9 + $0x6f8] sm:$0xff] }
 0x12f   : > { %1412 = vmatprep.subr.bf16.mxu1 %v1411_v50  ;;  %v562_v50 = vld [vmem:[%s2190_s9 + $0x430] sm:$0xff]  ;;  %v1579_v43 = vpack.c.bf16 %v651_v39, %v643_v38  ;;  %v423_v14 = vld [vmem:[#allocation3 + $0x58] sm:$0xff] }
 0x130   : > { %1538 = vmatpush1.bf16.xpose.msra.mxu0 %v1537_v49  ;;  %v566_v49 = vld [vmem:[%s2190_s9 + $0x450] sm:$0xff]  ;;  %v427_v15 = vld [vmem:[#allocation3 + $0x78] sm:$0xff] }
 0x131   : > { %1540 = vmatprep.subr.bf16.mxu0 %v1539_v51  ;;  %v570_v51 = vld [vmem:[%s2190_s9 + $0x470] sm:$0xff]  ;;  %v1433_v56 = vpack.c.bf16 %v566_v49, %v558_v48  ;;  %v655_v48 = vld [vmem:[%s2190_s9 + $0x718] sm:$0xff] }
 0x132   : > { %v1561_v57 = vpack.c.bf16 %v570_v51, %v562_v50  ;;  %v663_v49 = vld [vmem:[%s2190_s9 + $0x758] sm:$0xff] }
 0x133   : > { %v659_v50 = vld [vmem:[%s2190_s9 + $0x738] sm:$0xff]  ;;  %v1455_v54 = vpack.c.bf16 %v663_v49, %v655_v48 }
 0x134   : > { %v667_v51 = vld [vmem:[%s2190_s9 + $0x778] sm:$0xff] }
 0x135   : > { %v1583_v55 = vpack.c.bf16 %v667_v51, %v659_v50  ;;  %v1005_v13 = vld [vmem:[%s2201_s15] sm:$0xff] }
 0x136   : > { %1414 = vmatpush1.bf16.xpose.msra.mxu1 %v1413_v60  ;;  %v574_v60 = vld [vmem:[%s2190_s9 + $0x490] sm:$0xff] }
 0x137   : > { %1416 = vmatprep.subr.bf16.mxu1 %v1415_v62  ;;  %v578_v62 = vld [vmem:[%s2190_s9 + $0x4b0] sm:$0xff] }
 0x138   : > { %1542 = vmatpush1.bf16.xpose.msra.mxu0 %v1541_v61  ;;  %v582_v61 = vld [vmem:[%s2190_s9 + $0x4d0] sm:$0xff] }
 0x139   : > { %1544 = vmatprep.subr.bf16.mxu0 %v1543_v63  ;;  %v586_v63 = vld [vmem:[%s2190_s9 + $0x4f0] sm:$0xff]  ;;  %v1437_v4 = vpack.c.bf16 %v582_v61, %v574_v60  ;;  %v671_v60 = vld [vmem:[%s2190_s9 + $0x798] sm:$0xff] }
 0x13a   : > { %v1565_v5 = vpack.c.bf16 %v586_v63, %v578_v62  ;;  %v679_v61 = vld [vmem:[%s2190_s9 + $0x7d8] sm:$0xff] }
 0x13b   : > { %v675_v62 = vld [vmem:[%s2190_s9 + $0x7b8] sm:$0xff]  ;;  %v1459_v2 = vpack.c.bf16 %v679_v61, %v671_v60 }
 0x13c   : > { %v683_v63 = vld [vmem:[%s2190_s9 + $0x7f8] sm:$0xff] }
 0x13d   : > { %v1587_v3 = vpack.c.bf16 %v683_v63, %v675_v62 }
 0x13e   : > { %1418 = vmatpush1.bf16.xpose.msra.mxu1 %v1417_v8  ;;  %v590_v8 = vld [vmem:[%s2190_s9 + $0x510] sm:$0xff] }
 0x13f   : > { %1420 = vmatprep.subr.bf16.mxu1 %v1419_v10  ;;  %v594_v10 = vld [vmem:[%s2190_s9 + $0x530] sm:$0xff] }
 0x140   : > { %1546 = vmatpush1.bf16.xpose.msra.mxu0 %v1545_v9  ;;  %v598_v9 = vld [vmem:[%s2190_s9 + $0x550] sm:$0xff] }
 0x141   : > { %1548 = vmatprep.subr.bf16.mxu0 %v1547_v11  ;;  %v602_v11 = vld [vmem:[%s2190_s9 + $0x570] sm:$0xff]  ;;  %v1441_v16 = vpack.c.bf16 %v598_v9, %v590_v8 }
 0x142   : > { %v1569_v17 = vpack.c.bf16 %v602_v11, %v594_v10  ;;  %v1006_v10 = vld [vmem:[%s2201_s15 + $0x8] sm:$0xff] }
 0x143   : > { %v414_v11 = vld [vmem:[#allocation3 + $0x10] sm:$0xff] }
 0x146   : > { %1422 = vmatpush1.bf16.xpose.msra.mxu1 %v1421_v20  ;;  %v606_v20 = vld [vmem:[%s2190_s9 + $0x590] sm:$0xff] }
 0x147   : > { %1424 = vmatprep.subr.bf16.mxu1 %v1423_v22  ;;  %v610_v22 = vld [vmem:[%s2190_s9 + $0x5b0] sm:$0xff] }
 0x148   : > { %1550 = vmatpush1.bf16.xpose.msra.mxu0 %v1549_v21  ;;  %v614_v21 = vld [vmem:[%s2190_s9 + $0x5d0] sm:$0xff] }
 0x149   : > { %1552 = vmatprep.subr.bf16.mxu0 %v1551_v23  ;;  %v618_v23 = vld [vmem:[%s2190_s9 + $0x5f0] sm:$0xff]  ;;  %v1445_v28 = vpack.c.bf16 %v614_v21, %v606_v20  ;;  %v1003_v20 = vld [vmem:[%s2531_s3] sm:$0xff]  ;;  %v1097_v21 = vlaneseq }
 0x14a   : > { %v1573_v29 = vpack.c.bf16 %v618_v23, %v610_v22 }
 0x14b   : > { %v1098_v22 = vshrl.u32 %v1097_v21, 7 }
 0x14d   : > { %v1099_v25 = vsub.s32 0, %v1098_v22 }
 0x14e   : > { %1426 = vmatpush1.bf16.xpose.msra.mxu1 %v1425_v32  ;;  %v622_v32 = vld [vmem:[%s2190_s9 + $0x610] sm:$0xff] }
 0x14f   : > { %1428 = vmatprep.subr.bf16.mxu1 %v1427_v34  ;;  %v626_v34 = vld [vmem:[%s2190_s9 + $0x630] sm:$0xff] }
 0x150   : > { %1554 = vmatpush1.bf16.xpose.msra.mxu0 %v1553_v33  ;;  %v630_v33 = vld [vmem:[%s2190_s9 + $0x650] sm:$0xff] }
 0x151   : > { %1556 = vmatprep.subr.bf16.mxu0 %v1555_v35  ;;  %v634_v35 = vld [vmem:[%s2190_s9 + $0x670] sm:$0xff]  ;;  %v1449_v40 = vpack.c.bf16 %v630_v33, %v622_v32 }
 0x152   : > { %v1577_v41 = vpack.c.bf16 %v634_v35, %v626_v34  ;;  %v1100_v34 = vrot.slane %v1095_v27, %v1099_v25 }
 0x156   : > { %1430 = vmatpush1.bf16.xpose.msra.mxu1 %v1429_v44  ;;  %v638_v44 = vld [vmem:[%s2190_s9 + $0x690] sm:$0xff] }
 0x157   : > { %1432 = vmatprep.subr.bf16.mxu1 %v1431_v46  ;;  %v642_v46 = vld [vmem:[%s2190_s9 + $0x6b0] sm:$0xff] }
 0x158   : > { %1558 = vmatpush1.bf16.xpose.msra.mxu0 %v1557_v45  ;;  %v646_v45 = vld [vmem:[%s2190_s9 + $0x6d0] sm:$0xff] }
 0x159   : > { %1560 = vmatprep.subr.bf16.mxu0 %v1559_v47  ;;  %v650_v47 = vld [vmem:[%s2190_s9 + $0x6f0] sm:$0xff]  ;;  %v1453_v52 = vpack.c.bf16 %v646_v45, %v638_v44 }
 0x15a   : > { %v1581_v53 = vpack.c.bf16 %v650_v47, %v642_v46 }
 0x15e   : > { %1434 = vmatpush1.bf16.xpose.msra.mxu1 %v1433_v56  ;;  %v654_v56 = vld [vmem:[%s2190_s9 + $0x710] sm:$0xff] }
 0x15f   : > { %1436 = vmatprep.subr.bf16.mxu1 %v1435_v58  ;;  %v658_v58 = vld [vmem:[%s2190_s9 + $0x730] sm:$0xff] }
 0x160   : > { %1562 = vmatpush1.bf16.xpose.msra.mxu0 %v1561_v57  ;;  %v662_v57 = vld [vmem:[%s2190_s9 + $0x750] sm:$0xff] }
 0x161   : > { %1564 = vmatprep.subr.bf16.mxu0 %v1563_v59  ;;  %v666_v59 = vld [vmem:[%s2190_s9 + $0x770] sm:$0xff]  ;;  %v1457_v0 = vpack.c.bf16 %v662_v57, %v654_v56 }
 0x162   : > { %v1585_v1 = vpack.c.bf16 %v666_v59, %v658_v58 }
 0x166   : > { %1438 = vmatpush1.bf16.xpose.msra.mxu1 %v1437_v4  ;;  %v670_v4 = vld [vmem:[%s2190_s9 + $0x790] sm:$0xff] }
 0x167   : > { %1440 = vmatprep.subr.bf16.mxu1 %v1439_v6  ;;  %v674_v6 = vld [vmem:[%s2190_s9 + $0x7b0] sm:$0xff] }
 0x168   : > { %1566 = vmatpush1.bf16.xpose.msra.mxu0 %v1565_v5  ;;  %v678_v5 = vld [vmem:[%s2190_s9 + $0x7d0] sm:$0xff] }
 0x169   : > { %1568 = vmatprep.subr.bf16.mxu0 %v1567_v7  ;;  %v682_v7 = vld [vmem:[%s2190_s9 + $0x7f0] sm:$0xff]  ;;  %v1461_v8 = vpack.c.bf16 %v678_v5, %v670_v4  ;;  %s1826_s9 = scalar_lea.vmem %s1825_s13, 1024 }
 0x16a   : > { %v1589_v9 = vpack.c.bf16 %v682_v7, %v674_v6  ;;  %p1828_p6 = scmp.lt.s32.totalorder %s1826_s9, %s1820_s16 }
 0x16c   : > { %p1829_p8 = por %p1828_p6, %p1827_p7 }
 0x16e   : > { %1442 = vmatpush1.bf16.xpose.msra.mxu1 %v1441_v16  ;;  %v422_v16 = vld [vmem:[#allocation3 + $0x50] sm:$0xff]  ;;  %p1830_p12 = pnand %p1829_p8, %p1823_p4 }
 0x16f   : > { %1444 = vmatprep.subr.bf16.mxu1 %v1443_v18  ;;  %v1918_v18 = vmov 0.0  }
 0x170   : > { %1570 = vmatpush1.bf16.xpose.msra.mxu0 %v1569_v17  ;;  %v426_v17 = vld [vmem:[#allocation3 + $0x70] sm:$0xff] }
 0x171   : > { %1572 = vmatprep.subr.bf16.mxu0 %v1571_v19  ;;  %v1004_v19 = vld [vmem:[%s2531_s3 + $0x8] sm:$0xff] }
 0x176   : > { %1446 = vmatpush1.bf16.xpose.msra.mxu1 %v1445_v28  ;;  %v1103_v28 = vsub.s32 1, %v1098_v22 }
 0x177   : > { %1448 = vmatprep.subr.bf16.mxu1 %v1447_v30 }
 0x178   : > { %1574 = vmatpush1.bf16.xpose.msra.mxu0 %v1573_v29  ;;  %v1104_v36 = vrot.slane %v1095_v27, %v1103_v28 }
 0x179   : > { %1576 = vmatprep.subr.bf16.mxu0 %v1575_v31 }
 0x17e   : > { %1450 = vmatpush1.bf16.xpose.msra.mxu1 %v1449_v40 }
 0x17f   : > { %1452 = vmatprep.subr.bf16.mxu1 %v1451_v42 }
 0x180   : > { %1578 = vmatpush1.bf16.xpose.msra.mxu0 %v1577_v41 }
 0x181   : > { %1580 = vmatprep.subr.bf16.mxu0 %v1579_v43 }
 0x186   : > { %1454 = vmatpush1.bf16.xpose.msra.mxu1 %v1453_v52 }
 0x187   : > { %1456 = vmatprep.subr.bf16.mxu1 %v1455_v54 }
 0x188   : > { %1582 = vmatpush1.bf16.xpose.msra.mxu0 %v1581_v53 }
 0x189   : > { %1584 = vmatprep.subr.bf16.mxu0 %v1583_v55 }
 0x18e   : > { %1458 = vmatpush1.bf16.xpose.msra.mxu1 %v1457_v0 }
 0x18f   : > { %1460 = vmatprep.subr.bf16.mxu1 %v1459_v2 }
 0x190   : > { %1586 = vmatpush1.bf16.xpose.msra.mxu0 %v1585_v1 }
 0x191   : > { %1588 = vmatprep.subr.bf16.mxu0 %v1587_v3 }
 0x196   : > { %1462 = vmatpush1.bf16.xpose.msra.mxu1 %v1461_v8 }
 0x197   : > { %1591 = vmatprep.subr.mxu1 %v1006_v10 }
 0x198   : > { %1590 = vmatpush1.bf16.xpose.msra.mxu0 %v1589_v9 }
 0x199   : > { %1014 = vmatprep.subr.mxu0 %v1006_v10 }
 0x19d   : > { %826 = vmatmul.mubr.f32.vlgmr.msra.gmra.mrb[0].mxu1 %v414_v11 }
 0x19e   : > { %1592 = vmatpush1.msra.mxu1 %v1005_v13  ;;  %831 = vmatprep.mubr.f32.mxu1 %v423_v14 }
 0x19f   : > { %980 = vmatmul.mubr.f32.vlgmr.msra.gmra.mrb[0].mxu0 %v418_v12 }
 0x1a0   : > { %1015 = vmatpush1.msra.mxu0 %v1005_v13  ;;  %985 = vmatprep.mubr.f32.mxu0 %v427_v15 }
 0x1a1   : > { %832 = vmatmul.mubr.f32.gmra.mrb[2].mxu1 %v422_v16 }
 0x1a2   : > { %1084 = vmatprep.mubr.f32.mxu1 %v1918_v18 }
 0x1a3   : > { %986 = vmatmul.mubr.f32.gmra.mrb[2].mxu0 %v426_v17 }
 0x1a4   : > { %1078 = vmatprep.mubr.f32.mxu0 %v1918_v18 }
 0x1a5   : > { %1324 = vmatmul.mubr.msk.f32.vlgmr.msra.gmra.mrb[4].mxu1 %vm1007_vm0, %v1004_v19 }
 0x1a7   : > { %1323 = vmatmul.mubr.msk.f32.vlgmr.msra.gmra.mrb[0].mxu0 %vm1007_vm0, %v1003_v20 }
 0x270   : > { %v827_v23 = vpop.f32.mrb[0].mxu1 }
 0x271   : > { %v829_v24 = vpop.f32.mrb[1].mxu1 }
 0x274   : > { %v833_v26 = vpop.f32.mrb[2].mxu1 }
 0x275   : > { %v835_v30 = vpop.f32.mrb[3].mxu1 }
 0x276   : > { %v987_v29 = vpop.f32.mrb[2].mxu0 }
 0x277   : > { %v1597_v31 = vadd.f32 %v987_v29, %v833_v26  ;;  %v989_v32 = vpop.f32.mrb[3].mxu0 }
 0x278   : > { %v1600_v33 = vadd.f32 %v989_v32, %v835_v30  ;;  %v1086_v35 = vpop.f32.mrb[4].mxu1 }
 0x279   : > { %v1598_v38 = vadd.f32 %v1597_v31, %v1086_v35  ;;  %v1088_v39 = vpop.f32.mrb[5].mxu1 }
 0x27a   : > { %v1080_v37 = vpop.f32.mrb[0].mxu0  ;;  %v1601_v42 = vadd.f32 %v1600_v33, %v1088_v39 }
 0x27b   : > { %v1593_v40 = vadd.f32 %v1080_v37, %v827_v23  ;;  %v1082_v41 = vpop.f32.mrb[1].mxu0  ;;  %v1599_v43 = vadd.f32 %v1598_v38, %v1100_v34 }
 0x27c   : > { %v1595_v44 = vadd.f32 %v1082_v41, %v829_v24  ;;  %v1602_v46 = vadd.f32 %v1601_v42, %v1104_v36 }
 0x27d   : > { %v1594_v45 = vadd.f32 %v1593_v40, %v1100_v34  ;;  %1117 = vst [vmem:[%s385_s20 + $0x10] sm:$0xff] %v1599_v43 }
 0x27e   : > { %v1596_v47 = vadd.f32 %v1595_v44, %v1104_v36  ;;  %1118 = vst [vmem:[%s385_s20 + $0x18] sm:$0xff] %v1602_v46 }
 0x27f   : > { %1115 = vst [vmem:[%s385_s20] sm:$0xff] %v1594_v45 }
 0x280   : > { %1116 = vst [vmem:[%s385_s20 + $0x8] sm:$0xff] %v1596_v47 }
 0x281   : > { %1833 = shalt.err (!%p1830_p12)
}
 0x282   : > { %s1834_s27 = scalar_lea.hbm %s2479_s12, 512  ;;  %s1838_s17 = scalar_lea.hbm %s2533_s5, 1024 }
 0x283   : > { %p1835_p0 = scmp.ne.s32.totalorder %s2479_s12, %s1834_s27  ;;  %p1839_p1 = scmp.lt.u32.totalorder %s2479_s12, %s2533_s5 }
 0x284   : > { %p1840_p3 = scmp.lt.u32.totalorder %s1838_s17, %s1834_s27  ;;  %p1842_p5 = scmp.lt.u32.totalorder %s1834_s27, %s2479_s12 }
 0x285   : > { %p1836_p2 = pnand %p1835_p0, %p2575_p10 }
 0x286   : > { %p1841_p9 = por %p1840_p3, %p1839_p1 }
 0x287   : > { %p1837_p11 = pneg %p1836_p2 }
 0x288   : > { %p1843_p13 = por %p1842_p5, %p1841_p9 }
 0x28a   : > { %p1844_p4 = pnand %p1843_p13, %p1837_p11 }
 0x28c   : > { %1847 = shalt.err (!%p1844_p4)
}
 0x28d   : > { %s1920_s28 = smov 256   ;;  %s1921_s24 = smov 512  }
 0x28e   : > { %s1922_s14 = smov 16  }
 0x28f   : > { %1623 = dma.vmem_to_hbm [thread:$0]  (%p2575_p10), %s2474_s30, 512, %s2479_s12, %s1120_s21, %s1920_s28, %s1921_s24, %s1922_s14  }
 0x290 PF: > { %s2576_s25 = sld [smem:[#allocation20_spill]]  ;;  %s2577_s20 = sld [smem:[#allocation17_spill]] }
 0x291   : > { %s1151_s29 = sand.u32 1, %s1890_s18  }
 0x292   : > { %s1152_s6 = scalar_lea.sflag [#allocation5], %s1151_s29 }
 0x296   : > { %p2578_p7 = scmp.ne.s32.totalorder %s2576_s25, 0  ;;  %p2579_p6 = scmp.ge.s32.totalorder %s2577_s20, 2 }
 0x298   : > { %p1640_p8 = pnand %p2579_p6, %p2578_p7 }
 0x29a   : > { %1885 = dma.done.wait (!%p1640_p8), %s1152_s6, 512  }
 0x29b   : > { %1887 = vsyncadd (!%p1640_p8), %s1152_s6, 4294966784  ;;  %s25_s23 = sadd.s32 1, %s2577_s20   ;;  %s2580_s16 = sld [smem:[#allocation16_spill]] }
 0x29c   : > { %p22_p12 = scmp.ge.s32.totalorder %s25_s23, 4   ;;  %s2581_s20 = sld [smem:[#allocation19_spill]] }
 0x29d   : > { %s2582_s10 = sld [smem:[#allocation18_spill]]  ;;  %s2583_s18 = smov %s1894_s19 }
 0x29e   : > { %s2585_s21 = smov %s1906_s22  ;;  %24 = sbr.rel (!%p22_p12) target bundleno = 11 (0xb), region = 126 }
 0x2a1   : > { %s2584_s19 = smov %s2580_s16 }
 0x2a3   : > { %s2586_s22 = smov %s2582_s10 }
 0x2a5   :  { %1157 = vsyncpa [#allocation4], 1 }
 0x2a6   :  { %1159 = vsyncpa [#allocation4 + $0x1], 1 }
 0x2a7   :  { %1160 = vsyncpa [#allocation7], 1 }
 0x2a8   :  { %1162 = vsyncpa [#allocation7 + $0x1], 1 }
 0x2a9   :  { %1163 = vsyncpa [#allocation10], 1 }
 0x2aa   :  { %1165 = vsyncpa [#allocation10 + $0x1], 1 }
 0x2ab   :  { %1166 = vsyncpa [#allocation5], 1 }
 0x2ac   :  { %1168 = vsyncpa [#allocation5 + $0x1], 1 }

</bundles_post_ra>
